<compile_context>
chip_gen: v7x
topology: tpu7x:2x2x1
jax: 0.10.0
libtpu: 0.0.40
codegen_flags: <defaults>
</compile_context>

<pallas_src>
from functools import partial

import jax
import jax.numpy as jnp
from jax import lax
from jax.experimental import pallas as pl
from jax.experimental.pallas import tpu as pltpu


def _pick_m_chunk(hw):
    """Row-chunk for the register accumulator (~8 vregs at 64 rows x 128 lanes f32)."""
    for c in (64, 128, 32, 16, 8):
        if hw % c == 0:
            return c
    return hw


def _conv3x3x3_relu_kernel(xcol_ref, w_ref, o_ref, *, m_chunk):
    """One (batch, depth) output slab.

    xcol_ref : [D+2, H*W, 9*Cin]  bf16   im2col'd (kh,kw) taps of the padded input
    w_ref    : [3, 9*Cin, CP]     bf16   per-kd weights (conv cols in [0, G), rest zero)
    o_ref    : [H*W, CP]          f32    relu(conv) output slab
    """
    d = pl.program_id(1)
    hw = o_ref.shape[0]
    for m0 in range(0, hw, m_chunk):          # static unroll; acc lives in vregs
        rows = pl.ds(m0, m_chunk)
        acc = jnp.dot(xcol_ref[d, rows, :], w_ref[0],
                      preferred_element_type=jnp.float32)
        acc = acc + jnp.dot(xcol_ref[d + 1, rows, :], w_ref[1],
                            preferred_element_type=jnp.float32)
        acc = acc + jnp.dot(xcol_ref[d + 2, rows, :], w_ref[2],
                            preferred_element_type=jnp.float32)
        o_ref[rows, :] = jnp.maximum(acc, 0.0).astype(o_ref.dtype)


def make_dense_forward(x, w):
    """PyTorch make_dense forward (norm='None'):
         cat([x, relu(conv3d(x, w, padding=1, bias=False))], dim=1)
    x: [N, Cin, D, H, W] f32 (NCDHW);  w: [G, Cin, 3, 3, 3] f32 (PyTorch OIDHW).
    Returns [N, Cin+G, D, H, W] f32.  The first Cin channels are an exact copy of x.
    """
    N, Cin, D, H, W = x.shape
    G = w.shape[0]
    HW = H * W
    K = 9 * Cin                                  # contraction dim after (kh,kw) im2col
    CP = max(128, pl.cdiv(G, 128) * 128)         # lane-dense MXU N-dim / output store width
    m_chunk = _pick_m_chunk(HW)

    # ---- prologue (XLA): NCDHW -> NDHWC, bf16, pad-by-1, (kh,kw) im2col, flatten (H,W) ----
    xc = jnp.transpose(x, (0, 2, 3, 4, 1)).astype(jnp.bfloat16)            # [N,D,H,W,Cin]
    xp = jnp.pad(xc, ((0, 0), (1, 1), (1, 1), (1, 1), (0, 0)))             # [N,D+2,H+2,W+2,Cin]
    taps = [xp[:, :, kh:kh + H, kw:kw + W, :] for kh in range(3) for kw in range(3)]
    xcol = jnp.concatenate(taps, axis=-1).reshape(N, D + 2, HW, K)         # [N,D+2,HW,9*Cin]

    # Per-kd weight [3, 9*Cin, CP]: cols [0,G) = conv weights, cols [G,CP) = zero lane padding.
    wt = jnp.transpose(w, (2, 3, 4, 1, 0)).reshape(3, K, G)                # kd, (kh,kw,ci), g
    w_full = jnp.zeros((3, K, CP), jnp.float32).at[:, :, :G].set(wt).astype(jnp.bfloat16)

    # ---- VMEM budget / cost hints ----
    k_lanes = pl.cdiv(K, 128) * 128
    xcol_vmem = (D + 2) * HW * k_lanes * 2       # resident padded sample (bf16, lane-padded)
    w_vmem = 3 * K * CP * 2
    out_vmem = HW * CP * 4
    vmem_limit = int(min(100 * 2**20, 2 * (xcol_vmem + w_vmem + out_vmem) + (4 << 20)))

    flops = 2 * N * D * 3 * HW * K * CP
    bytes_accessed = xcol.size * 2 + w_full.size * 2 + N * D * HW * CP * 4

    out = pl.pallas_call(
        partial(_conv3x3x3_relu_kernel, m_chunk=m_chunk),
        out_shape=jax.ShapeDtypeStruct((N, D, HW, CP), jnp.float32),
        grid=(N, D),
        in_specs=[
            # Full padded, im2col'd sample resident across the D axis (block index constant in d).
            pl.BlockSpec((None, D + 2, HW, K), lambda n, d: (n, 0, 0, 0)),
            # Full weight resident for the whole grid.
            pl.BlockSpec((3, K, CP), lambda n, d: (0, 0, 0)),
        ],
        out_specs=pl.BlockSpec((None, None, HW, CP), lambda n, d: (n, d, 0, 0)),
        compiler_params=pltpu.CompilerParams(
            dimension_semantics=("parallel", "parallel"),
            vmem_limit_bytes=vmem_limit),
        cost_estimate=pl.CostEstimate(flops=flops, transcendentals=0,
                                      bytes_accessed=bytes_accessed),
    )(xcol, w_full)

    # ---- epilogue (XLA): drop lane padding, back to NCDHW, exact-f32 concat with x ----
    conv_out = jnp.transpose(out.reshape(N, D, H, W, CP)[..., :G], (0, 4, 1, 2, 3))
    return jnp.concatenate([x, conv_out], axis=1)


def make_dense_ref(x, w):
    """Pure-JAX f32 reference of the PyTorch forward, for validation."""
    conv = lax.conv_general_dilated(
        x, w, window_strides=(1, 1, 1), padding=((1, 1), (1, 1), (1, 1)),
        dimension_numbers=("NCDHW", "OIDHW", "NCDHW"))
    return jnp.concatenate([x, jax.nn.relu(conv)], axis=1)


if __name__ == "__main__":
    n_channels, growth_rate = 16, 16
    N, D, H, W = 2, 8, 16, 16

    key = jax.random.PRNGKey(0)
    kx, kw = jax.random.split(key)
    x = jax.random.normal(kx, (N, n_channels, D, H, W), dtype=jnp.float32)
    w = 0.05 * jax.random.normal(kw, (growth_rate, n_channels, 3, 3, 3),
                                 dtype=jnp.float32)

    out = jax.jit(make_dense_forward)(x, w)
    out = jax.block_until_ready(out)

    assert out.shape == (N, n_channels + growth_rate, D, H, W), out.shape
    assert bool(jnp.all(jnp.isfinite(out)))

    # torch.cat pass-through of x must be bit-exact.
    assert bool(jnp.array_equal(out[:, :n_channels], x))

    ref = make_dense_ref(x, w)
    rel_err = float(jnp.max(jnp.abs(out - ref) / (jnp.abs(ref) + 1.0)))
    assert rel_err < 2e-2, rel_err   # bf16 operands, f32 MXU accumulation

    print("KERNEL_OK")
</pallas_src>

<mosaic_0001>
module attributes {stable_mosaic.version = 11 : i64} {
  func.func @_conv3x3x3_relu_kernel(%arg0: i32, %arg1: i32, %arg2: memref<1x10x256x144xbf16, #tpu.memory_space<vmem>>, %arg3: memref<3x144x128xbf16, #tpu.memory_space<vmem>>, %arg4: memref<1x1x256x128xf32, #tpu.memory_space<vmem>>) attributes {dimension_semantics = [#tpu.dimension_semantics<parallel>, #tpu.dimension_semantics<parallel>], iteration_bounds = array<i64: 2, 8>, scalar_prefetch = 0 : i64, scratch_operands = 0 : i64, tpu.core_type = #tpu.core_type<tc>, window_params = [{transform_indices = @transform_0, window_bounds = array<i64: 1, 10, 256, 144>}, {pipeline_mode = #tpu.pipeline_mode<synchronous>, transform_indices = @transform_1, window_bounds = array<i64: 3, 144, 128>}, {transform_indices = @transform_2, window_bounds = array<i64: 1, 1, 256, 128>}]} {
    %c0 = arith.constant 0 : index
    %0 = arith.index_cast %arg1 : i32 to index
    %c0_0 = arith.constant 0 : index
    %c0_1 = arith.constant 0 : index
    %1 = vector.load %arg2[%c0, %0, %c0_0, %c0_1] : memref<1x10x256x144xbf16, #tpu.memory_space<vmem>>, vector<1x1x64x144xbf16>
    %2 = vector.shape_cast %1 : vector<1x1x64x144xbf16> to vector<64x144xbf16>
    %c0_2 = arith.constant 0 : index
    %c0_3 = arith.constant 0 : index
    %c0_4 = arith.constant 0 : index
    %3 = vector.load %arg3[%c0_2, %c0_3, %c0_4] : memref<3x144x128xbf16, #tpu.memory_space<vmem>>, vector<1x144x128xbf16>
    %4 = vector.shape_cast %3 : vector<1x144x128xbf16> to vector<144x128xbf16>
    %cst = arith.constant dense<0.000000e+00> : vector<64x128xf32>
    %5 = tpu.matmul %2, %4, %cst {dimension_numbers = #tpu.dot_dimension_numbers<[1], [0], [0], [1], [0, 0, 1, 1], [], []>} : vector<64x144xbf16>, vector<144x128xbf16>, vector<64x128xf32> -> vector<64x128xf32>
    %c1_i32 = arith.constant 1 : i32
    %6 = arith.addi %arg1, %c1_i32 : i32
    %c0_5 = arith.constant 0 : index
    %7 = arith.index_cast %6 : i32 to index
    %c0_6 = arith.constant 0 : index
    %c0_7 = arith.constant 0 : index
    %8 = vector.load %arg2[%c0_5, %7, %c0_6, %c0_7] : memref<1x10x256x144xbf16, #tpu.memory_space<vmem>>, vector<1x1x64x144xbf16>
    %9 = vector.shape_cast %8 : vector<1x1x64x144xbf16> to vector<64x144xbf16>
    %c1 = arith.constant 1 : index
    %c0_8 = arith.constant 0 : index
    %c0_9 = arith.constant 0 : index
    %10 = vector.load %arg3[%c1, %c0_8, %c0_9] : memref<3x144x128xbf16, #tpu.memory_space<vmem>>, vector<1x144x128xbf16>
    %11 = vector.shape_cast %10 : vector<1x144x128xbf16> to vector<144x128xbf16>
    %cst_10 = arith.constant dense<0.000000e+00> : vector<64x128xf32>
    %12 = tpu.matmul %9, %11, %cst_10 {dimension_numbers = #tpu.dot_dimension_numbers<[1], [0], [0], [1], [0, 0, 1, 1], [], []>} : vector<64x144xbf16>, vector<144x128xbf16>, vector<64x128xf32> -> vector<64x128xf32>
    %13 = arith.addf %5, %12 : vector<64x128xf32>
    %c2_i32 = arith.constant 2 : i32
    %14 = arith.addi %arg1, %c2_i32 : i32
    %c0_11 = arith.constant 0 : index
    %15 = arith.index_cast %14 : i32 to index
    %c0_12 = arith.constant 0 : index
    %c0_13 = arith.constant 0 : index
    %16 = vector.load %arg2[%c0_11, %15, %c0_12, %c0_13] : memref<1x10x256x144xbf16, #tpu.memory_space<vmem>>, vector<1x1x64x144xbf16>
    %17 = vector.shape_cast %16 : vector<1x1x64x144xbf16> to vector<64x144xbf16>
    %c2 = arith.constant 2 : index
    %c0_14 = arith.constant 0 : index
    %c0_15 = arith.constant 0 : index
    %18 = vector.load %arg3[%c2, %c0_14, %c0_15] : memref<3x144x128xbf16, #tpu.memory_space<vmem>>, vector<1x144x128xbf16>
    %19 = vector.shape_cast %18 : vector<1x144x128xbf16> to vector<144x128xbf16>
    %cst_16 = arith.constant dense<0.000000e+00> : vector<64x128xf32>
    %20 = tpu.matmul %17, %19, %cst_16 {dimension_numbers = #tpu.dot_dimension_numbers<[1], [0], [0], [1], [0, 0, 1, 1], [], []>} : vector<64x144xbf16>, vector<144x128xbf16>, vector<64x128xf32> -> vector<64x128xf32>
    %21 = arith.addf %13, %20 : vector<64x128xf32>
    %cst_17 = arith.constant 0.000000e+00 : f32
    %22 = vector.broadcast %cst_17 : f32 to vector<64x128xf32>
    %23 = arith.maximumf %21, %22 : vector<64x128xf32>
    %c0_18 = arith.constant 0 : index
    %c0_19 = arith.constant 0 : index
    %c0_20 = arith.constant 0 : index
    %c0_21 = arith.constant 0 : index
    %24 = vector.load %arg4[%c0_18, %c0_19, %c0_20, %c0_21] : memref<1x1x256x128xf32, #tpu.memory_space<vmem>>, vector<1x1x64x128xf32>
    %25 = vector.shape_cast %24 : vector<1x1x64x128xf32> to vector<64x128xf32>
    %26 = vector.shape_cast %23 : vector<64x128xf32> to vector<1x1x64x128xf32>
    tpu.vector_store %arg4[%c0_18, %c0_19, %c0_20, %c0_21], %26 {strides = array<i32>} : memref<1x1x256x128xf32, #tpu.memory_space<vmem>>, vector<1x1x64x128xf32>,
    %c0_22 = arith.constant 0 : index
    %27 = arith.index_cast %arg1 : i32 to index
    %c64 = arith.constant 64 : index
    %c0_23 = arith.constant 0 : index
    %28 = vector.load %arg2[%c0_22, %27, %c64, %c0_23] : memref<1x10x256x144xbf16, #tpu.memory_space<vmem>>, vector<1x1x64x144xbf16>
    %29 = vector.shape_cast %28 : vector<1x1x64x144xbf16> to vector<64x144xbf16>
    %c0_24 = arith.constant 0 : index
    %c0_25 = arith.constant 0 : index
    %c0_26 = arith.constant 0 : index
    %30 = vector.load %arg3[%c0_24, %c0_25, %c0_26] : memref<3x144x128xbf16, #tpu.memory_space<vmem>>, vector<1x144x128xbf16>
    %31 = vector.shape_cast %30 : vector<1x144x128xbf16> to vector<144x128xbf16>
    %cst_27 = arith.constant dense<0.000000e+00> : vector<64x128xf32>
    %32 = tpu.matmul %29, %31, %cst_27 {dimension_numbers = #tpu.dot_dimension_numbers<[1], [0], [0], [1], [0, 0, 1, 1], [], []>} : vector<64x144xbf16>, vector<144x128xbf16>, vector<64x128xf32> -> vector<64x128xf32>
    %c1_i32_28 = arith.constant 1 : i32
    %33 = arith.addi %arg1, %c1_i32_28 : i32
    %c0_29 = arith.constant 0 : index
    %34 = arith.index_cast %33 : i32 to index
    %c64_30 = arith.constant 64 : index
    %c0_31 = arith.constant 0 : index
    %35 = vector.load %arg2[%c0_29, %34, %c64_30, %c0_31] : memref<1x10x256x144xbf16, #tpu.memory_space<vmem>>, vector<1x1x64x144xbf16>
    %36 = vector.shape_cast %35 : vector<1x1x64x144xbf16> to vector<64x144xbf16>
    %c1_32 = arith.constant 1 : index
    %c0_33 = arith.constant 0 : index
    %c0_34 = arith.constant 0 : index
    %37 = vector.load %arg3[%c1_32, %c0_33, %c0_34] : memref<3x144x128xbf16, #tpu.memory_space<vmem>>, vector<1x144x128xbf16>
    %38 = vector.shape_cast %37 : vector<1x144x128xbf16> to vector<144x128xbf16>
    %cst_35 = arith.constant dense<0.000000e+00> : vector<64x128xf32>
    %39 = tpu.matmul %36, %38, %cst_35 {dimension_numbers = #tpu.dot_dimension_numbers<[1], [0], [0], [1], [0, 0, 1, 1], [], []>} : vector<64x144xbf16>, vector<144x128xbf16>, vector<64x128xf32> -> vector<64x128xf32>
    %40 = arith.addf %32, %39 : vector<64x128xf32>
    %c2_i32_36 = arith.constant 2 : i32
    %41 = arith.addi %arg1, %c2_i32_36 : i32
    %c0_37 = arith.constant 0 : index
    %42 = arith.index_cast %41 : i32 to index
    %c64_38 = arith.constant 64 : index
    %c0_39 = arith.constant 0 : index
    %43 = vector.load %arg2[%c0_37, %42, %c64_38, %c0_39] : memref<1x10x256x144xbf16, #tpu.memory_space<vmem>>, vector<1x1x64x144xbf16>
    %44 = vector.shape_cast %43 : vector<1x1x64x144xbf16> to vector<64x144xbf16>
    %c2_40 = arith.constant 2 : index
    %c0_41 = arith.constant 0 : index
    %c0_42 = arith.constant 0 : index
    %45 = vector.load %arg3[%c2_40, %c0_41, %c0_42] : memref<3x144x128xbf16, #tpu.memory_space<vmem>>, vector<1x144x128xbf16>
    %46 = vector.shape_cast %45 : vector<1x144x128xbf16> to vector<144x128xbf16>
    %cst_43 = arith.constant dense<0.000000e+00> : vector<64x128xf32>
    %47 = tpu.matmul %44, %46, %cst_43 {dimension_numbers = #tpu.dot_dimension_numbers<[1], [0], [0], [1], [0, 0, 1, 1], [], []>} : vector<64x144xbf16>, vector<144x128xbf16>, vector<64x128xf32> -> vector<64x128xf32>
    %48 = arith.addf %40, %47 : vector<64x128xf32>
    %cst_44 = arith.constant 0.000000e+00 : f32
    %49 = vector.broadcast %cst_44 : f32 to vector<64x128xf32>
    %50 = arith.maximumf %48, %49 : vector<64x128xf32>
    %c0_45 = arith.constant 0 : index
    %c0_46 = arith.constant 0 : index
    %c64_47 = arith.constant 64 : index
    %c0_48 = arith.constant 0 : index
    %51 = vector.load %arg4[%c0_45, %c0_46, %c64_47, %c0_48] : memref<1x1x256x128xf32, #tpu.memory_space<vmem>>, vector<1x1x64x128xf32>
    %52 = vector.shape_cast %51 : vector<1x1x64x128xf32> to vector<64x128xf32>
    %53 = vector.shape_cast %50 : vector<64x128xf32> to vector<1x1x64x128xf32>
    tpu.vector_store %arg4[%c0_45, %c0_46, %c64_47, %c0_48], %53 {strides = array<i32>} : memref<1x1x256x128xf32, #tpu.memory_space<vmem>>, vector<1x1x64x128xf32>,
    %c0_49 = arith.constant 0 : index
    %54 = arith.index_cast %arg1 : i32 to index
    %c128 = arith.constant 128 : index
    %c0_50 = arith.constant 0 : index
    %55 = vector.load %arg2[%c0_49, %54, %c128, %c0_50] : memref<1x10x256x144xbf16, #tpu.memory_space<vmem>>, vector<1x1x64x144xbf16>
    %56 = vector.shape_cast %55 : vector<1x1x64x144xbf16> to vector<64x144xbf16>
    %c0_51 = arith.constant 0 : index
    %c0_52 = arith.constant 0 : index
    %c0_53 = arith.constant 0 : index
    %57 = vector.load %arg3[%c0_51, %c0_52, %c0_53] : memref<3x144x128xbf16, #tpu.memory_space<vmem>>, vector<1x144x128xbf16>
    %58 = vector.shape_cast %57 : vector<1x144x128xbf16> to vector<144x128xbf16>
    %cst_54 = arith.constant dense<0.000000e+00> : vector<64x128xf32>
    %59 = tpu.matmul %56, %58, %cst_54 {dimension_numbers = #tpu.dot_dimension_numbers<[1], [0], [0], [1], [0, 0, 1, 1], [], []>} : vector<64x144xbf16>, vector<144x128xbf16>, vector<64x128xf32> -> vector<64x128xf32>
    %c1_i32_55 = arith.constant 1 : i32
    %60 = arith.addi %arg1, %c1_i32_55 : i32
    %c0_56 = arith.constant 0 : index
    %61 = arith.index_cast %60 : i32 to index
    %c128_57 = arith.constant 128 : index
    %c0_58 = arith.constant 0 : index
    %62 = vector.load %arg2[%c0_56, %61, %c128_57, %c0_58] : memref<1x10x256x144xbf16, #tpu.memory_space<vmem>>, vector<1x1x64x144xbf16>
    %63 = vector.shape_cast %62 : vector<1x1x64x144xbf16> to vector<64x144xbf16>
    %c1_59 = arith.constant 1 : index
    %c0_60 = arith.constant 0 : index
    %c0_61 = arith.constant 0 : index
    %64 = vector.load %arg3[%c1_59, %c0_60, %c0_61] : memref<3x144x128xbf16, #tpu.memory_space<vmem>>, vector<1x144x128xbf16>
    %65 = vector.shape_cast %64 : vector<1x144x128xbf16> to vector<144x128xbf16>
    %cst_62 = arith.constant dense<0.000000e+00> : vector<64x128xf32>
    %66 = tpu.matmul %63, %65, %cst_62 {dimension_numbers = #tpu.dot_dimension_numbers<[1], [0], [0], [1], [0, 0, 1, 1], [], []>} : vector<64x144xbf16>, vector<144x128xbf16>, vector<64x128xf32> -> vector<64x128xf32>
    %67 = arith.addf %59, %66 : vector<64x128xf32>
    %c2_i32_63 = arith.constant 2 : i32
    %68 = arith.addi %arg1, %c2_i32_63 : i32
    %c0_64 = arith.constant 0 : index
    %69 = arith.index_cast %68 : i32 to index
    %c128_65 = arith.constant 128 : index
    %c0_66 = arith.constant 0 : index
    %70 = vector.load %arg2[%c0_64, %69, %c128_65, %c0_66] : memref<1x10x256x144xbf16, #tpu.memory_space<vmem>>, vector<1x1x64x144xbf16>
    %71 = vector.shape_cast %70 : vector<1x1x64x144xbf16> to vector<64x144xbf16>
    %c2_67 = arith.constant 2 : index
    %c0_68 = arith.constant 0 : index
    %c0_69 = arith.constant 0 : index
    %72 = vector.load %arg3[%c2_67, %c0_68, %c0_69] : memref<3x144x128xbf16, #tpu.memory_space<vmem>>, vector<1x144x128xbf16>
    %73 = vector.shape_cast %72 : vector<1x144x128xbf16> to vector<144x128xbf16>
    %cst_70 = arith.constant dense<0.000000e+00> : vector<64x128xf32>
    %74 = tpu.matmul %71, %73, %cst_70 {dimension_numbers = #tpu.dot_dimension_numbers<[1], [0], [0], [1], [0, 0, 1, 1], [], []>} : vector<64x144xbf16>, vector<144x128xbf16>, vector<64x128xf32> -> vector<64x128xf32>
    %75 = arith.addf %67, %74 : vector<64x128xf32>
    %cst_71 = arith.constant 0.000000e+00 : f32
    %76 = vector.broadcast %cst_71 : f32 to vector<64x128xf32>
    %77 = arith.maximumf %75, %76 : vector<64x128xf32>
    %c0_72 = arith.constant 0 : index
    %c0_73 = arith.constant 0 : index
    %c128_74 = arith.constant 128 : index
    %c0_75 = arith.constant 0 : index
    %78 = vector.load %arg4[%c0_72, %c0_73, %c128_74, %c0_75] : memref<1x1x256x128xf32, #tpu.memory_space<vmem>>, vector<1x1x64x128xf32>
    %79 = vector.shape_cast %78 : vector<1x1x64x128xf32> to vector<64x128xf32>
    %80 = vector.shape_cast %77 : vector<64x128xf32> to vector<1x1x64x128xf32>
    tpu.vector_store %arg4[%c0_72, %c0_73, %c128_74, %c0_75], %80 {strides = array<i32>} : memref<1x1x256x128xf32, #tpu.memory_space<vmem>>, vector<1x1x64x128xf32>,
    %c0_76 = arith.constant 0 : index
    %81 = arith.index_cast %arg1 : i32 to index
    %c192 = arith.constant 192 : index
    %c0_77 = arith.constant 0 : index
    %82 = vector.load %arg2[%c0_76, %81, %c192, %c0_77] : memref<1x10x256x144xbf16, #tpu.memory_space<vmem>>, vector<1x1x64x144xbf16>
    %83 = vector.shape_cast %82 : vector<1x1x64x144xbf16> to vector<64x144xbf16>
    %c0_78 = arith.constant 0 : index
    %c0_79 = arith.constant 0 : index
    %c0_80 = arith.constant 0 : index
    %84 = vector.load %arg3[%c0_78, %c0_79, %c0_80] : memref<3x144x128xbf16, #tpu.memory_space<vmem>>, vector<1x144x128xbf16>
    %85 = vector.shape_cast %84 : vector<1x144x128xbf16> to vector<144x128xbf16>
    %cst_81 = arith.constant dense<0.000000e+00> : vector<64x128xf32>
    %86 = tpu.matmul %83, %85, %cst_81 {dimension_numbers = #tpu.dot_dimension_numbers<[1], [0], [0], [1], [0, 0, 1, 1], [], []>} : vector<64x144xbf16>, vector<144x128xbf16>, vector<64x128xf32> -> vector<64x128xf32>
    %c1_i32_82 = arith.constant 1 : i32
    %87 = arith.addi %arg1, %c1_i32_82 : i32
    %c0_83 = arith.constant 0 : index
    %88 = arith.index_cast %87 : i32 to index
    %c192_84 = arith.constant 192 : index
    %c0_85 = arith.constant 0 : index
    %89 = vector.load %arg2[%c0_83, %88, %c192_84, %c0_85] : memref<1x10x256x144xbf16, #tpu.memory_space<vmem>>, vector<1x1x64x144xbf16>
    %90 = vector.shape_cast %89 : vector<1x1x64x144xbf16> to vector<64x144xbf16>
    %c1_86 = arith.constant 1 : index
    %c0_87 = arith.constant 0 : index
    %c0_88 = arith.constant 0 : index
    %91 = vector.load %arg3[%c1_86, %c0_87, %c0_88] : memref<3x144x128xbf16, #tpu.memory_space<vmem>>, vector<1x144x128xbf16>
    %92 = vector.shape_cast %91 : vector<1x144x128xbf16> to vector<144x128xbf16>
    %cst_89 = arith.constant dense<0.000000e+00> : vector<64x128xf32>
    %93 = tpu.matmul %90, %92, %cst_89 {dimension_numbers = #tpu.dot_dimension_numbers<[1], [0], [0], [1], [0, 0, 1, 1], [], []>} : vector<64x144xbf16>, vector<144x128xbf16>, vector<64x128xf32> -> vector<64x128xf32>
    %94 = arith.addf %86, %93 : vector<64x128xf32>
    %c2_i32_90 = arith.constant 2 : i32
    %95 = arith.addi %arg1, %c2_i32_90 : i32
    %c0_91 = arith.constant 0 : index
    %96 = arith.index_cast %95 : i32 to index
    %c192_92 = arith.constant 192 : index
    %c0_93 = arith.constant 0 : index
    %97 = vector.load %arg2[%c0_91, %96, %c192_92, %c0_93] : memref<1x10x256x144xbf16, #tpu.memory_space<vmem>>, vector<1x1x64x144xbf16>
    %98 = vector.shape_cast %97 : vector<1x1x64x144xbf16> to vector<64x144xbf16>
    %c2_94 = arith.constant 2 : index
    %c0_95 = arith.constant 0 : index
    %c0_96 = arith.constant 0 : index
    %99 = vector.load %arg3[%c2_94, %c0_95, %c0_96] : memref<3x144x128xbf16, #tpu.memory_space<vmem>>, vector<1x144x128xbf16>
    %100 = vector.shape_cast %99 : vector<1x144x128xbf16> to vector<144x128xbf16>
    %cst_97 = arith.constant dense<0.000000e+00> : vector<64x128xf32>
    %101 = tpu.matmul %98, %100, %cst_97 {dimension_numbers = #tpu.dot_dimension_numbers<[1], [0], [0], [1], [0, 0, 1, 1], [], []>} : vector<64x144xbf16>, vector<144x128xbf16>, vector<64x128xf32> -> vector<64x128xf32>
    %102 = arith.addf %94, %101 : vector<64x128xf32>
    %cst_98 = arith.constant 0.000000e+00 : f32
    %103 = vector.broadcast %cst_98 : f32 to vector<64x128xf32>
    %104 = arith.maximumf %102, %103 : vector<64x128xf32>
    %c0_99 = arith.constant 0 : index
    %c0_100 = arith.constant 0 : index
    %c192_101 = arith.constant 192 : index
    %c0_102 = arith.constant 0 : index
    %105 = vector.load %arg4[%c0_99, %c0_100, %c192_101, %c0_102] : memref<1x1x256x128xf32, #tpu.memory_space<vmem>>, vector<1x1x64x128xf32>
    %106 = vector.shape_cast %105 : vector<1x1x64x128xf32> to vector<64x128xf32>
    %107 = vector.shape_cast %104 : vector<64x128xf32> to vector<1x1x64x128xf32>
    tpu.vector_store %arg4[%c0_99, %c0_100, %c192_101, %c0_102], %107 {strides = array<i32>} : memref<1x1x256x128xf32, #tpu.memory_space<vmem>>, vector<1x1x64x128xf32>,
    return
  }
  func.func @transform_0(%arg0: i32, %arg1: i32) -> (i32, i32, i32, i32) {
    %c0_i32 = arith.constant 0 : i32
    %c0_i32_0 = arith.constant 0 : i32
    %c0_i32_1 = arith.constant 0 : i32
    %c0_i32_2 = arith.constant 0 : i32
    return %arg0, %c0_i32, %c0_i32_0, %c0_i32_1 : i32, i32, i32, i32
  }
  func.func @transform_1(%arg0: i32, %arg1: i32) -> (i32, i32, i32) {
    %c0_i32 = arith.constant 0 : i32
    %c0_i32_0 = arith.constant 0 : i32
    %c0_i32_1 = arith.constant 0 : i32
    %c0_i32_2 = arith.constant 0 : i32
    return %c0_i32, %c0_i32_0, %c0_i32_1 : i32, i32, i32
  }
  func.func @transform_2(%arg0: i32, %arg1: i32) -> (i32, i32, i32, i32) {
    %c0_i32 = arith.constant 0 : i32
    %c0_i32_0 = arith.constant 0 : i32
    %c0_i32_1 = arith.constant 0 : i32
    return %arg0, %arg1, %c0_i32, %c0_i32_0 : i32, i32, i32, i32
  }
}

</mosaic_0001>

<bundles_post_ra>
// kernel: make_dense_forward.1
= control target key start
LH: loop header
LB: loop body
LE: loop exit
PB: predicated region body
PF: predicated region fallthrough
CT: control target
= control target key end

     0   :  { %s3641_s9 = smov 0   ;;  %s3643_s10 = smov 0   ;;  %s4313_s0 = inlined_call_operand.vmem [shape: bf16[2,10,256,144], index: 0, kind: input, shape index: {}]   ;;  %s4314_s1 = inlined_call_operand.vmem [shape: bf16[3,144,128], index: 1, kind: input, shape index: {}]   ;;  %s4315_s2 = inlined_call_operand.vmem [shape: f32[2,8,256,128], index: 2, kind: output, shape index: {}]  }
   0x1   :  { %s3645_s11 = smov 0   ;;  %s3647_s12 = smov 0  }
   0x2   :  { %s3649_s13 = smov 0  }
   0x3 LB: > { %s21_s14 = sadd.s32 1, %s3615_s11  ;;  %s24_s15 = sadd.s32 1, %s3619_s12  ;;  %s3623_s13 = sphi %s3649_s13, %s12_s13   ;;  %s3619_s12 = sphi %s3647_s12, %s4319_s12   ;;  %s3615_s11 = sphi %s3645_s11, %s4318_s11   ;;  %s3611_s10 = sphi %s3643_s10, %s4317_s10   ;;  %s3607_s9 = sphi %s3641_s9, %s4316_s9  }
   0x4   : > { %p22_p0 = scmp.ge.s32.totalorder %s21_s14, 8  ;;  %p2691_p1 = scmp.ge.s32.totalorder %s3623_s13, 1 }
   0x5   : > { %p126_p2 = scmp.lt.s32.totalorder %s3623_s13, 17 }
   0x6   : > { %s4321_s14 = smov (%p22_p0, %s21_s14), 0  ;;  %s4323_s15 = smov (!%p22_p0, %s24_s15), %s3619_s12 }
   0x7   : > { %p127_p3 = pnand %p2691_p1, %p126_p2  ;;  %p26_p4 = scmp.ge.s32.totalorder %s4323_s15, 2 }
   0x8   : > { %v3333_v0 = vld [vmem:[%s4314_s1 + $0x48] sm:$0xff] (!%p127_p3)   ;;  %v3625_v1 = vmov (!%p127_p3), 0   ;;  %p152_p5 = scmp.lt.s32.totalorder (!%p127_p3), %s3611_s10, 1  ;;  %v3335_v3 = vld [vmem:[%s4314_s1 + $0x50] sm:$0xff] (!%p127_p3)   ;;  %v3337_v5 = vld [vmem:[%s4314_s1 + $0x58] sm:$0xff] (!%p127_p3)   ;;  %s3162_s8 = sshll.u32 (!%p127_p3), %s3607_s9, 8 }
   0x9   : > { %s4325_s15 = smov (%p26_p4, %s4323_s15), 0  ;;  %130 = sbr.rel (%p127_p3) target bundleno = 467 (0x1d3), region = 28 }
   0xa   : > { %330 = vmatprep.subr.bf16.mxu0 (!%p127_p3), %v3625_v1  ;;  %938 = vmatprep.subr.bf16.mxu1 (!%p127_p3), %v3625_v1  ;;  %v3334_v2 = vld [vmem:[%s4314_s1 + $0x48] sm:$0xff] (!%p127_p3)   ;;  %v3336_v4 = vld [vmem:[%s4314_s1 + $0x50] sm:$0xff] (!%p127_p3)   ;;  %v3338_v6 = vld [vmem:[%s4314_s1 + $0x58] sm:$0xff] (!%p127_p3)   ;;  %vm317_vm0 = vcmask (!%p127_p3), 130048   ;;  %p159_p6 = scmp.lt.s32.totalorder (!%p127_p3), %s3607_s9, 7 }
   0xb   : > { %331 = vmatpush1.bf16.msra.mxu0 (!%p127_p3), %v3333_v0  ;;  %939 = vmatpush1.bf16.msra.mxu1 (!%p127_p3), %v3334_v2  ;;  %v3339_v7 = vld [vmem:[%s4314_s1 + $0x60] sm:$0xff] (!%p127_p3)   ;;  %v3341_v9 = vld [vmem:[%s4314_s1 + $0x68] sm:$0xff] (!%p127_p3)   ;;  %v3343_v11 = vld [vmem:[%s4314_s1 + $0x70] sm:$0xff] (!%p127_p3)  }
   0xc   : > { %332 = vmatprep.subr.bf16.mxu0 (!%p127_p3), %v3625_v1  ;;  %940 = vmatprep.subr.bf16.mxu1 (!%p127_p3), %v3625_v1  ;;  %v3340_v8 = vld [vmem:[%s4314_s1 + $0x60] sm:$0xff] (!%p127_p3)   ;;  %v3342_v10 = vld [vmem:[%s4314_s1 + $0x68] sm:$0xff] (!%p127_p3)   ;;  %v3344_v12 = vld [vmem:[%s4314_s1 + $0x70] sm:$0xff] (!%p127_p3)  }
   0xd   : > { %v3345_v15 = vld [vmem:[%s4314_s1 + $0x78] sm:$0xff] (!%p127_p3)   ;;  %v3347_v17 = vld [vmem:[%s4314_s1 + $0x80] sm:$0xff] (!%p127_p3)   ;;  %v3349_v19 = vld [vmem:[%s4314_s1 + $0x88] sm:$0xff] (!%p127_p3)  }
   0xe   : > { %v3346_v16 = vld [vmem:[%s4314_s1 + $0x78] sm:$0xff] (!%p127_p3)   ;;  %v3348_v18 = vld [vmem:[%s4314_s1 + $0x80] sm:$0xff] (!%p127_p3)   ;;  %v3350_v20 = vld [vmem:[%s4314_s1 + $0x88] sm:$0xff] (!%p127_p3)  }
   0xf   : > { %333 = vmatpush1.bf16.msra.mxu0 (!%p127_p3), %v3335_v3  ;;  %941 = vmatpush1.bf16.msra.mxu1 (!%p127_p3), %v3336_v4  ;;  %v3357_v23 = vld [vmem:[%s4314_s1] sm:$0xff] (!%p127_p3)   ;;  %v3359_v27 = vld [vmem:[%s4314_s1 + $0x8] sm:$0xff] (!%p127_p3)   ;;  %v3361_v29 = vld [vmem:[%s4314_s1 + $0x10] sm:$0xff] (!%p127_p3)  }
  0x10   : > { %s4327_s10 = smov (!%p152_p5, %s3611_s10), 1  ;;  %334 = vmatprep.subr.bf16.mxu0 %v3625_v1  ;;  %942 = vmatprep.subr.bf16.mxu1 %v3625_v1  ;;  %v3358_v24 = vld [vmem:[%s4314_s1] sm:$0xff]   ;;  %v3360_v28 = vld [vmem:[%s4314_s1 + $0x8] sm:$0xff]   ;;  %v3362_v32 = vld [vmem:[%s4314_s1 + $0x10] sm:$0xff]   ;;  %s4329_s9 = smov (!%p159_p6, %s3607_s9), 7 }
  0x11   : > { %s3291_s28 = smul.u32 2560, %s4327_s10  ;;  %v3368_v35 = vld [vmem:[%s4314_s1 + $0x18] sm:$0xff]   ;;  %v3371_v37 = vld [vmem:[%s4314_s1 + $0x20] sm:$0xff]   ;;  %v3378_v43 = vld [vmem:[%s4314_s1 + $0x28] sm:$0xff]   ;;  %s2693_s16 = sshll.u32 %s4329_s9, 5 }
  0x12   : > { %v3370_v36 = vld [vmem:[%s4314_s1 + $0x18] sm:$0xff]   ;;  %v3372_v40 = vld [vmem:[%s4314_s1 + $0x20] sm:$0xff]   ;;  %v3380_v44 = vld [vmem:[%s4314_s1 + $0x28] sm:$0xff]   ;;  %s2694_s17 = sshll.u32 %s4327_s10, 8 }
  0x13   : > { %335 = vmatpush1.bf16.msra.mxu0 %v3337_v5  ;;  %943 = vmatpush1.bf16.msra.mxu1 %v3338_v6  ;;  %s156_s7 = scalar_lea.vmem %s4313_s0, %s3291_s28  ;;  %v3381_v45 = vld [vmem:[%s4314_s1 + $0x30] sm:$0xff]   ;;  %v3388_v51 = vld [vmem:[%s4314_s1 + $0x38] sm:$0xff]   ;;  %v3391_v53 = vld [vmem:[%s4314_s1 + $0x40] sm:$0xff]   ;;  %s163_s18 = sadd.s32 %s2694_s17, %s2693_s16 }
  0x14   : > { %336 = vmatprep.subr.bf16.mxu0 %v3625_v1  ;;  %944 = vmatprep.subr.bf16.mxu1 %v3625_v1  ;;  %s3720_s20 = scalar_lea.vmem %s156_s7, %s3162_s8  ;;  %v3382_v48 = vld [vmem:[%s4314_s1 + $0x30] sm:$0xff]   ;;  %v3390_v52 = vld [vmem:[%s4314_s1 + $0x38] sm:$0xff]   ;;  %v3392_v54 = vld [vmem:[%s4314_s1 + $0x40] sm:$0xff]   ;;  %s2695_s19 = sshll.u32 %s163_s18, 3 }
  0x15   : > { %v3353_v13 = vld [vmem:[%s3720_s20 + $0x104] ss:$8 sps:$4 sm:$0xff]   ;;  %v3351_v21 = vld [vmem:[%s3720_s20 + $0x100] ss:$8 sps:$4 sm:$0xff]   ;;  %v3363_v25 = vld [vmem:[%s3720_s20 + $0x114] ss:$8 sps:$4 sm:$0xff]   ;;  %s4264_s23 = scalar_lea.vmem %s4315_s2, %s2695_s19 }
  0x16   : > { %v3356_v14 = vld [vmem:[%s3720_s20 + $0x144] ss:$8 sps:$4 sm:$0xff]   ;;  %2742 = vmatprep.mubr.msk.bf16.mxu0 %vm317_vm0, %v3353_v13  ;;  %v3354_v22 = vld [vmem:[%s3720_s20 + $0x140] ss:$8 sps:$4 sm:$0xff]   ;;  %v3365_v26 = vld [vmem:[%s3720_s20 + $0x154] ss:$8 sps:$4 sm:$0xff]  }
  0x17   : > { %337 = vmatpush1.bf16.msra.mxu0 %v3339_v7  ;;  %945 = vmatpush1.bf16.msra.mxu1 %v3340_v8  ;;  %v3367_v30 = vld [vmem:[%s3720_s20 + $0x110] ss:$8 sps:$4 sm:$0xff]   ;;  %v3373_v33 = vld [vmem:[%s3720_s20 + $0x124] ss:$8 sps:$4 sm:$0xff]   ;;  %v3377_v38 = vld [vmem:[%s3720_s20 + $0x120] ss:$8 sps:$4 sm:$0xff]  }
  0x18   : > { %338 = vmatprep.subr.bf16.mxu0 %v3625_v1  ;;  %946 = vmatprep.subr.bf16.mxu1 %v3625_v1  ;;  %v3369_v31 = vld [vmem:[%s3720_s20 + $0x150] ss:$8 sps:$4 sm:$0xff]   ;;  %v3375_v34 = vld [vmem:[%s3720_s20 + $0x164] ss:$8 sps:$4 sm:$0xff]   ;;  %v3379_v39 = vld [vmem:[%s3720_s20 + $0x160] ss:$8 sps:$4 sm:$0xff]  }
  0x19   : > { %2858 = vmatprep.mubr.msk.bf16.mxu1 %vm317_vm0, %v3356_v14  ;;  %v3383_v41 = vld [vmem:[%s3720_s20 + $0x134] ss:$8 sps:$4 sm:$0xff]   ;;  %v3387_v46 = vld [vmem:[%s3720_s20 + $0x130] ss:$8 sps:$4 sm:$0xff]   ;;  %v3395_v49 = vld [vmem:[%s3720_s20 + $0x4] ss:$8 sps:$4 sm:$0xff]  }
  0x1a   : > { %v3385_v42 = vld [vmem:[%s3720_s20 + $0x174] ss:$8 sps:$4 sm:$0xff]   ;;  %v3389_v47 = vld [vmem:[%s3720_s20 + $0x170] ss:$8 sps:$4 sm:$0xff]   ;;  %v3398_v50 = vld [vmem:[%s3720_s20 + $0x44] ss:$8 sps:$4 sm:$0xff]  }
  0x1b   : > { %339 = vmatpush1.bf16.msra.mxu0 %v3341_v9  ;;  %947 = vmatpush1.bf16.msra.mxu1 %v3342_v10  ;;  %v3393_v55 = vld [vmem:[%s3720_s20] ss:$8 sps:$4 sm:$0xff]   ;;  %v3399_v57 = vld [vmem:[%s4314_s1 + $0x90] sm:$0xff]   ;;  %v3401_v61 = vld [vmem:[%s4314_s1 + $0x98] sm:$0xff]  }
  0x1c   : > { %340 = vmatprep.subr.bf16.mxu0 %v3625_v1  ;;  %948 = vmatprep.subr.bf16.mxu1 %v3625_v1  ;;  %v3396_v56 = vld [vmem:[%s3720_s20 + $0x40] ss:$8 sps:$4 sm:$0xff]   ;;  %v3400_v58 = vld [vmem:[%s4314_s1 + $0x90] sm:$0xff]   ;;  %v3402_v62 = vld [vmem:[%s4314_s1 + $0x98] sm:$0xff]  }
  0x1d   : > { %v3405_v59 = vld [vmem:[%s3720_s20 + $0x14] ss:$8 sps:$4 sm:$0xff]   ;;  %v3403_v63 = vld [vmem:[%s4314_s1 + $0xa0] sm:$0xff]   ;;  %v3409_v0 = vld [vmem:[%s3720_s20 + $0x10] ss:$8 sps:$4 sm:$0xff]  }
  0x1e   : > { %v3407_v60 = vld [vmem:[%s3720_s20 + $0x54] ss:$8 sps:$4 sm:$0xff]   ;;  %v3410_v2 = vld [vmem:[%s3720_s20 + $0x50] ss:$8 sps:$4 sm:$0xff]   ;;  %v3404_v3 = vld [vmem:[%s4314_s1 + $0xa0] sm:$0xff]  }
  0x1f   : > { %341 = vmatpush1.bf16.msra.mxu0 %v3343_v11  ;;  %949 = vmatpush1.bf16.msra.mxu1 %v3344_v12  ;;  %v3415_v4 = vld [vmem:[%s3720_s20 + $0x24] ss:$8 sps:$4 sm:$0xff]   ;;  %v3413_v8 = vld [vmem:[%s4314_s1 + $0xb0] sm:$0xff]   ;;  %v3419_v9 = vld [vmem:[%s3720_s20 + $0x20] ss:$8 sps:$4 sm:$0xff]  }
  0x20   : > { %342 = vmatprep.subr.bf16.mxu0 %v3625_v1  ;;  %950 = vmatprep.subr.bf16.mxu1 %v3625_v1  ;;  %v3417_v5 = vld [vmem:[%s3720_s20 + $0x64] ss:$8 sps:$4 sm:$0xff]   ;;  %v3420_v10 = vld [vmem:[%s3720_s20 + $0x60] ss:$8 sps:$4 sm:$0xff]   ;;  %v3414_v11 = vld [vmem:[%s4314_s1 + $0xb0] sm:$0xff]  }
  0x21   : > { %v3411_v6 = vld [vmem:[%s4314_s1 + $0xa8] sm:$0xff]   ;;  %v3425_v12 = vld [vmem:[%s3720_s20 + $0x34] ss:$8 sps:$4 sm:$0xff]  }
  0x22   : > { %v3412_v7 = vld [vmem:[%s4314_s1 + $0xa8] sm:$0xff]   ;;  %v3427_v13 = vld [vmem:[%s3720_s20 + $0x74] ss:$8 sps:$4 sm:$0xff]  }
  0x23   : > { %343 = vmatpush1.bf16.msra.mxu0 %v3345_v15  ;;  %951 = vmatpush1.bf16.msra.mxu1 %v3346_v16  ;;  %v3421_v14 = vld [vmem:[%s4314_s1 + $0xb8] sm:$0xff]   ;;  %v3423_v16 = vld [vmem:[%s4314_s1 + $0xc0] sm:$0xff]  }
  0x24   : > { %344 = vmatprep.subr.bf16.mxu0 %v3625_v1  ;;  %952 = vmatprep.subr.bf16.mxu1 %v3625_v1  ;;  %v3422_v15 = vld [vmem:[%s4314_s1 + $0xb8] sm:$0xff]  }
  0x27   : > { %345 = vmatpush1.bf16.msra.mxu0 %v3347_v17  ;;  %953 = vmatpush1.bf16.msra.mxu1 %v3348_v18  ;;  %v3429_v17 = vld [vmem:[%s3720_s20 + $0x30] ss:$8 sps:$4 sm:$0xff]  }
  0x28   : > { %346 = vmatprep.subr.bf16.mxu0 %v3625_v1  ;;  %954 = vmatprep.subr.bf16.mxu1 %v3625_v1  ;;  %v3430_v18 = vld [vmem:[%s3720_s20 + $0x70] ss:$8 sps:$4 sm:$0xff]  }
  0x2b   : > { %347 = vmatpush1.bf16.msra.mxu0 %v3349_v19  ;;  %955 = vmatpush1.bf16.msra.mxu1 %v3350_v20  ;;  %v3424_v19 = vld [vmem:[%s4314_s1 + $0xc0] sm:$0xff]  }
  0x2c   : > { %497 = vmatprep.subr.bf16.mxu0 %v3625_v1  ;;  %1105 = vmatprep.subr.bf16.mxu1 %v3625_v1  ;;  %v3437_v20 = vld [vmem:[%s3720_s20 + $0x204] ss:$8 sps:$4 sm:$0xff]  }
  0x2e   : > { %363 = vmatmul.mubr.bf16.vlgmr.msra.gmra.mrb[0].mxu0 %v3351_v21  ;;  %971 = vmatmul.mubr.bf16.vlgmr.msra.gmra.mrb[0].mxu1 %v3354_v22  ;;  %v3440_v21 = vld [vmem:[%s3720_s20 + $0x244] ss:$8 sps:$4 sm:$0xff]  }
  0x2f   : > { %498 = vmatpush1.bf16.msra.mxu0 %v3357_v23  ;;  %1106 = vmatpush1.bf16.msra.mxu1 %v3358_v24  ;;  %v3431_v22 = vld [vmem:[%s4314_s1 + $0xc8] sm:$0xff]   ;;  %v3433_v24 = vld [vmem:[%s4314_s1 + $0xd0] sm:$0xff]  }
  0x30   : > { %499 = vmatprep.subr.bf16.mxu0 %v3625_v1  ;;  %1107 = vmatprep.subr.bf16.mxu1 %v3625_v1  ;;  %v3432_v23 = vld [vmem:[%s4314_s1 + $0xc8] sm:$0xff]  }
  0x31   : > { %2743 = vmatprep.mubr.msk.bf16.mxu0 %vm317_vm0, %v3363_v25  ;;  %2859 = vmatprep.mubr.msk.bf16.mxu1 %vm317_vm0, %v3365_v26  ;;  %v3434_v25 = vld [vmem:[%s4314_s1 + $0xd0] sm:$0xff]   ;;  %v3435_v26 = vld [vmem:[%s3720_s20 + $0x200] ss:$8 sps:$4 sm:$0xff]  }
  0x33   : > { %500 = vmatpush1.bf16.msra.mxu0 %v3359_v27  ;;  %1108 = vmatpush1.bf16.msra.mxu1 %v3360_v28  ;;  %v3438_v27 = vld [vmem:[%s3720_s20 + $0x240] ss:$8 sps:$4 sm:$0xff]  }
  0x34   : > { %501 = vmatprep.subr.bf16.mxu0 %v3625_v1  ;;  %1109 = vmatprep.subr.bf16.mxu1 %v3625_v1  ;;  %v3441_v28 = vld [vmem:[%s4314_s1 + $0x48] sm:$0xff]  }
  0x36   : > { %371 = vmatmul.mubr.bf16.gmra.mrb[4].mxu0 %v3367_v30  ;;  %979 = vmatmul.mubr.bf16.gmra.mrb[4].mxu1 %v3369_v31  ;;  %v3445_v30 = vld [vmem:[%s3720_s20 + $0x214] ss:$8 sps:$4 sm:$0xff]  }
  0x37   : > { %502 = vmatpush1.bf16.msra.mxu0 %v3361_v29  ;;  %1110 = vmatpush1.bf16.msra.mxu1 %v3362_v32  ;;  %v3442_v29 = vld [vmem:[%s4314_s1 + $0x48] sm:$0xff]   ;;  %v3447_v31 = vld [vmem:[%s3720_s20 + $0x254] ss:$8 sps:$4 sm:$0xff]  }
  0x38   : > { %503 = vmatprep.subr.bf16.mxu0 %v3625_v1  ;;  %1111 = vmatprep.subr.bf16.mxu1 %v3625_v1  ;;  %v3443_v32 = vld [vmem:[%s4314_s1 + $0x50] sm:$0xff]  }
  0x39   : > { %2744 = vmatprep.mubr.msk.bf16.mxu0 %vm317_vm0, %v3373_v33  ;;  %2860 = vmatprep.mubr.msk.bf16.mxu1 %vm317_vm0, %v3375_v34  ;;  %v3444_v33 = vld [vmem:[%s4314_s1 + $0x50] sm:$0xff]  }
  0x3a   : > { %v3449_v34 = vld [vmem:[%s3720_s20 + $0x210] ss:$8 sps:$4 sm:$0xff]  }
  0x3b   : > { %504 = vmatpush1.bf16.msra.mxu0 %v3368_v35  ;;  %1112 = vmatpush1.bf16.msra.mxu1 %v3370_v36  ;;  %v3450_v35 = vld [vmem:[%s3720_s20 + $0x250] ss:$8 sps:$4 sm:$0xff]  }
  0x3c   : > { %505 = vmatprep.subr.bf16.mxu0 %v3625_v1  ;;  %1113 = vmatprep.subr.bf16.mxu1 %v3625_v1  ;;  %v3451_v36 = vld [vmem:[%s4314_s1 + $0x58] sm:$0xff]  }
  0x3e   : > { %379 = vmatmul.mubr.bf16.gmra.mrb[8].mxu0 %v3377_v38  ;;  %987 = vmatmul.mubr.bf16.gmra.mrb[8].mxu1 %v3379_v39  ;;  %v3455_v38 = vld [vmem:[%s3720_s20 + $0x224] ss:$8 sps:$4 sm:$0xff]  }
  0x3f   : > { %506 = vmatpush1.bf16.msra.mxu0 %v3371_v37  ;;  %1114 = vmatpush1.bf16.msra.mxu1 %v3372_v40  ;;  %v3452_v37 = vld [vmem:[%s4314_s1 + $0x58] sm:$0xff]   ;;  %v3457_v39 = vld [vmem:[%s3720_s20 + $0x264] ss:$8 sps:$4 sm:$0xff]  }
  0x40   : > { %507 = vmatprep.subr.bf16.mxu0 %v3625_v1  ;;  %1115 = vmatprep.subr.bf16.mxu1 %v3625_v1  ;;  %v3453_v40 = vld [vmem:[%s4314_s1 + $0x60] sm:$0xff]  }
  0x41   : > { %2745 = vmatprep.mubr.msk.bf16.mxu0 %vm317_vm0, %v3383_v41  ;;  %2861 = vmatprep.mubr.msk.bf16.mxu1 %vm317_vm0, %v3385_v42  ;;  %v3454_v41 = vld [vmem:[%s4314_s1 + $0x60] sm:$0xff]  }
  0x42   : > { %v3459_v42 = vld [vmem:[%s3720_s20 + $0x220] ss:$8 sps:$4 sm:$0xff]  }
  0x43   : > { %508 = vmatpush1.bf16.msra.mxu0 %v3378_v43  ;;  %1116 = vmatpush1.bf16.msra.mxu1 %v3380_v44  ;;  %v3460_v43 = vld [vmem:[%s3720_s20 + $0x260] ss:$8 sps:$4 sm:$0xff]  }
  0x44   : > { %509 = vmatprep.subr.bf16.mxu0 %v3625_v1  ;;  %1117 = vmatprep.subr.bf16.mxu1 %v3625_v1  ;;  %v3461_v44 = vld [vmem:[%s4314_s1 + $0x68] sm:$0xff]  }
  0x46   : > { %387 = vmatmul.mubr.bf16.gmra.mrb[12].mxu0 %v3387_v46  ;;  %995 = vmatmul.mubr.bf16.gmra.mrb[12].mxu1 %v3389_v47  ;;  %v3465_v46 = vld [vmem:[%s3720_s20 + $0x234] ss:$8 sps:$4 sm:$0xff]  }
  0x47   : > { %510 = vmatpush1.bf16.msra.mxu0 %v3381_v45  ;;  %1118 = vmatpush1.bf16.msra.mxu1 %v3382_v48  ;;  %v3462_v45 = vld [vmem:[%s4314_s1 + $0x68] sm:$0xff]   ;;  %v3467_v47 = vld [vmem:[%s3720_s20 + $0x274] ss:$8 sps:$4 sm:$0xff]  }
  0x48   : > { %511 = vmatprep.subr.bf16.mxu0 %v3625_v1  ;;  %1119 = vmatprep.subr.bf16.mxu1 %v3625_v1  ;;  %v3463_v48 = vld [vmem:[%s4314_s1 + $0x70] sm:$0xff]  }
  0x49   : > { %2763 = vmatprep.mubr.msk.bf16.mxu0 %vm317_vm0, %v3395_v49  ;;  %2879 = vmatprep.mubr.msk.bf16.mxu1 %vm317_vm0, %v3398_v50  ;;  %v3464_v49 = vld [vmem:[%s4314_s1 + $0x70] sm:$0xff]  }
  0x4a   : > { %v3469_v50 = vld [vmem:[%s3720_s20 + $0x230] ss:$8 sps:$4 sm:$0xff]  }
  0x4b   : > { %512 = vmatpush1.bf16.msra.mxu0 %v3388_v51  ;;  %1120 = vmatpush1.bf16.msra.mxu1 %v3390_v52  ;;  %v3470_v51 = vld [vmem:[%s3720_s20 + $0x270] ss:$8 sps:$4 sm:$0xff]  }
  0x4c   : > { %513 = vmatprep.subr.bf16.mxu0 %v3625_v1  ;;  %1121 = vmatprep.subr.bf16.mxu1 %v3625_v1  ;;  %v3471_v52 = vld [vmem:[%s4314_s1 + $0x78] sm:$0xff]  }
  0x4f   : > { %514 = vmatpush1.bf16.msra.mxu0 %v3391_v53  ;;  %1122 = vmatpush1.bf16.msra.mxu1 %v3392_v54  ;;  %v3472_v53 = vld [vmem:[%s4314_s1 + $0x78] sm:$0xff]   ;;  %v3479_v54 = vld [vmem:[%s3720_s20 + $0x184] ss:$8 sps:$4 sm:$0xff]  }
  0x50   : > { %695 = vmatprep.subr.bf16.mxu0 %v3625_v1  ;;  %1298 = vmatprep.subr.bf16.mxu1 %v3625_v1 }
  0x52   : > { %530 = vmatmul.mubr.bf16.vlgmr.msra.gmra.mrb[0].mxu0 %v3393_v55  ;;  %1138 = vmatmul.mubr.bf16.vlgmr.msra.gmra.mrb[0].mxu1 %v3396_v56  ;;  %v3482_v55 = vld [vmem:[%s3720_s20 + $0x1c4] ss:$8 sps:$4 sm:$0xff]  }
  0x53   : > { %696 = vmatpush1.bf16.msra.mxu0 %v3399_v57  ;;  %1299 = vmatpush1.bf16.msra.mxu1 %v3400_v58  ;;  %v3473_v56 = vld [vmem:[%s4314_s1 + $0x80] sm:$0xff]   ;;  %v3475_v58 = vld [vmem:[%s4314_s1 + $0x88] sm:$0xff]  }
  0x54   : > { %697 = vmatprep.subr.bf16.mxu0 %v3625_v1  ;;  %1300 = vmatprep.subr.bf16.mxu1 %v3625_v1  ;;  %v3474_v57 = vld [vmem:[%s4314_s1 + $0x80] sm:$0xff]  }
  0x55   : > { %2764 = vmatprep.mubr.msk.bf16.mxu0 %vm317_vm0, %v3405_v59  ;;  %2880 = vmatprep.mubr.msk.bf16.mxu1 %vm317_vm0, %v3407_v60  ;;  %v3476_v59 = vld [vmem:[%s4314_s1 + $0x88] sm:$0xff]  }
  0x56   : > { %v3477_v60 = vld [vmem:[%s3720_s20 + $0x180] ss:$8 sps:$4 sm:$0xff]  }
  0x57   : > { %698 = vmatpush1.bf16.msra.mxu0 %v3401_v61  ;;  %1301 = vmatpush1.bf16.msra.mxu1 %v3402_v62  ;;  %v3480_v61 = vld [vmem:[%s3720_s20 + $0x1c0] ss:$8 sps:$4 sm:$0xff]  }
  0x58   : > { %699 = vmatprep.subr.bf16.mxu0 %v3625_v1  ;;  %1302 = vmatprep.subr.bf16.mxu1 %v3625_v1  ;;  %v3483_v62 = vld [vmem:[%s4314_s1] sm:$0xff]  }
  0x5a   : > { %538 = vmatmul.mubr.bf16.gmra.mrb[4].mxu0 %v3409_v0  ;;  %1146 = vmatmul.mubr.bf16.gmra.mrb[4].mxu1 %v3410_v2  ;;  %v3489_v0 = vld [vmem:[%s3720_s20 + $0x194] ss:$8 sps:$4 sm:$0xff]  }
  0x5b   : > { %700 = vmatpush1.bf16.msra.mxu0 %v3403_v63  ;;  %1303 = vmatpush1.bf16.msra.mxu1 %v3404_v3  ;;  %v3484_v63 = vld [vmem:[%s4314_s1] sm:$0xff]   ;;  %v3491_v2 = vld [vmem:[%s3720_s20 + $0x1d4] ss:$8 sps:$4 sm:$0xff]   ;;  %v3485_v3 = vld [vmem:[%s4314_s1 + $0x8] sm:$0xff]  }
  0x5c   : > { %701 = vmatprep.subr.bf16.mxu0 %v3625_v1  ;;  %1304 = vmatprep.subr.bf16.mxu1 %v3625_v1 }
  0x5d   : > { %2765 = vmatprep.mubr.msk.bf16.mxu0 %vm317_vm0, %v3415_v4  ;;  %2881 = vmatprep.mubr.msk.bf16.mxu1 %vm317_vm0, %v3417_v5  ;;  %v3486_v4 = vld [vmem:[%s4314_s1 + $0x8] sm:$0xff]   ;;  %v3493_v5 = vld [vmem:[%s3720_s20 + $0x190] ss:$8 sps:$4 sm:$0xff]  }
  0x5f   : > { %702 = vmatpush1.bf16.msra.mxu0 %v3411_v6  ;;  %1305 = vmatpush1.bf16.msra.mxu1 %v3412_v7  ;;  %v3487_v6 = vld [vmem:[%s4314_s1 + $0x10] sm:$0xff]  }
  0x60   : > { %703 = vmatprep.subr.bf16.mxu0 %v3625_v1  ;;  %1306 = vmatprep.subr.bf16.mxu1 %v3625_v1  ;;  %v3495_v7 = vld [vmem:[%s3720_s20 + $0x1d0] ss:$8 sps:$4 sm:$0xff]  }
  0x62   : > { %546 = vmatmul.mubr.bf16.gmra.mrb[8].mxu0 %v3419_v9  ;;  %1154 = vmatmul.mubr.bf16.gmra.mrb[8].mxu1 %v3420_v10  ;;  %v3499_v9 = vld [vmem:[%s3720_s20 + $0x1a4] ss:$8 sps:$4 sm:$0xff]  }
  0x63   : > { %704 = vmatpush1.bf16.msra.mxu0 %v3413_v8  ;;  %1307 = vmatpush1.bf16.msra.mxu1 %v3414_v11  ;;  %v3488_v8 = vld [vmem:[%s4314_s1 + $0x10] sm:$0xff]   ;;  %v3501_v10 = vld [vmem:[%s3720_s20 + $0x1e4] ss:$8 sps:$4 sm:$0xff]   ;;  %v3494_v11 = vld [vmem:[%s4314_s1 + $0x18] sm:$0xff]  }
  0x64   : > { %705 = vmatprep.subr.bf16.mxu0 %v3625_v1  ;;  %1308 = vmatprep.subr.bf16.mxu1 %v3625_v1 }
  0x65   : > { %2766 = vmatprep.mubr.msk.bf16.mxu0 %vm317_vm0, %v3425_v12  ;;  %2882 = vmatprep.mubr.msk.bf16.mxu1 %vm317_vm0, %v3427_v13  ;;  %v3496_v12 = vld [vmem:[%s4314_s1 + $0x18] sm:$0xff]   ;;  %v3497_v13 = vld [vmem:[%s4314_s1 + $0x20] sm:$0xff]  }
  0x67   : > { %706 = vmatpush1.bf16.msra.mxu0 %v3421_v14  ;;  %1309 = vmatpush1.bf16.msra.mxu1 %v3422_v15  ;;  %v3503_v14 = vld [vmem:[%s3720_s20 + $0x1a0] ss:$8 sps:$4 sm:$0xff]  }
  0x68   : > { %707 = vmatprep.subr.bf16.mxu0 %v3625_v1  ;;  %1310 = vmatprep.subr.bf16.mxu1 %v3625_v1  ;;  %v3505_v15 = vld [vmem:[%s3720_s20 + $0x1e0] ss:$8 sps:$4 sm:$0xff]  }
  0x6a   : > { %554 = vmatmul.mubr.bf16.gmra.mrb[12].mxu0 %v3429_v17  ;;  %1162 = vmatmul.mubr.bf16.gmra.mrb[12].mxu1 %v3430_v18  ;;  %v3509_v17 = vld [vmem:[%s3720_s20 + $0x1b4] ss:$8 sps:$4 sm:$0xff]  }
  0x6b   : > { %708 = vmatpush1.bf16.msra.mxu0 %v3423_v16  ;;  %1311 = vmatpush1.bf16.msra.mxu1 %v3424_v19  ;;  %v3498_v16 = vld [vmem:[%s4314_s1 + $0x20] sm:$0xff]   ;;  %v3511_v18 = vld [vmem:[%s3720_s20 + $0x1f4] ss:$8 sps:$4 sm:$0xff]   ;;  %v3504_v19 = vld [vmem:[%s4314_s1 + $0x28] sm:$0xff]  }
  0x6c   : > { %709 = vmatprep.subr.bf16.mxu0 %v3625_v1  ;;  %1312 = vmatprep.subr.bf16.mxu1 %v3625_v1 }
  0x6d   : > { %2811 = vmatprep.mubr.msk.bf16.mxu0 %vm317_vm0, %v3437_v20  ;;  %2926 = vmatprep.mubr.msk.bf16.mxu1 %vm317_vm0, %v3440_v21  ;;  %v3506_v20 = vld [vmem:[%s4314_s1 + $0x28] sm:$0xff]   ;;  %v3513_v21 = vld [vmem:[%s3720_s20 + $0x1b0] ss:$8 sps:$4 sm:$0xff]  }
  0x6f   : > { %710 = vmatpush1.bf16.msra.mxu0 %v3431_v22  ;;  %1313 = vmatpush1.bf16.msra.mxu1 %v3432_v23  ;;  %v3507_v22 = vld [vmem:[%s4314_s1 + $0x30] sm:$0xff]  }
  0x70   : > { %711 = vmatprep.subr.bf16.mxu0 %v3625_v1  ;;  %1314 = vmatprep.subr.bf16.mxu1 %v3625_v1  ;;  %v3515_v23 = vld [vmem:[%s3720_s20 + $0x1f0] ss:$8 sps:$4 sm:$0xff]  }
  0x73   : > { %712 = vmatpush1.bf16.msra.mxu0 %v3433_v24  ;;  %1315 = vmatpush1.bf16.msra.mxu1 %v3434_v25  ;;  %v3508_v24 = vld [vmem:[%s4314_s1 + $0x30] sm:$0xff]   ;;  %v3521_v25 = vld [vmem:[%s3720_s20 + $0x84] ss:$8 sps:$4 sm:$0xff]  }
  0x74   : > { %1541 = vmatprep.subr.bf16.mxu0 %v3625_v1  ;;  %2144 = vmatprep.subr.bf16.mxu1 %v3625_v1 }
  0x76   : > { %728 = vmatmul.mubr.bf16.vlgmr.msra.gmra.mrb[0].mxu0 %v3435_v26  ;;  %1331 = vmatmul.mubr.bf16.vlgmr.msra.gmra.mrb[0].mxu1 %v3438_v27  ;;  %v3524_v26 = vld [vmem:[%s3720_s20 + $0xc4] ss:$8 sps:$4 sm:$0xff]   ;;  %v3514_v27 = vld [vmem:[%s4314_s1 + $0x38] sm:$0xff]  }
  0x77   : > { %1542 = vmatpush1.bf16.msra.mxu0 %v3441_v28  ;;  %2145 = vmatpush1.bf16.msra.mxu1 %v3442_v29  ;;  %v3516_v28 = vld [vmem:[%s4314_s1 + $0x38] sm:$0xff]   ;;  %v3517_v29 = vld [vmem:[%s4314_s1 + $0x40] sm:$0xff]  }
  0x78   : > { %1543 = vmatprep.subr.bf16.mxu0 %v3625_v1  ;;  %2146 = vmatprep.subr.bf16.mxu1 %v3625_v1 }
  0x79   : > { %2812 = vmatprep.mubr.msk.bf16.mxu0 %vm317_vm0, %v3445_v30  ;;  %2927 = vmatprep.mubr.msk.bf16.mxu1 %vm317_vm0, %v3447_v31  ;;  %v3518_v30 = vld [vmem:[%s4314_s1 + $0x40] sm:$0xff]  }
  0x7a   : > { %v3519_v31 = vld [vmem:[%s3720_s20 + $0x80] ss:$8 sps:$4 sm:$0xff]  }
  0x7b   : > { %1544 = vmatpush1.bf16.msra.mxu0 %v3443_v32  ;;  %2147 = vmatpush1.bf16.msra.mxu1 %v3444_v33  ;;  %v3522_v32 = vld [vmem:[%s3720_s20 + $0xc0] ss:$8 sps:$4 sm:$0xff]   ;;  %v3525_v33 = vld [vmem:[%s4314_s1 + $0x90] sm:$0xff]  }
  0x7c   : > { %1545 = vmatprep.subr.bf16.mxu0 %v3625_v1  ;;  %2148 = vmatprep.subr.bf16.mxu1 %v3625_v1 }
  0x7e   : > { %736 = vmatmul.mubr.bf16.gmra.mrb[4].mxu0 %v3449_v34  ;;  %1339 = vmatmul.mubr.bf16.gmra.mrb[4].mxu1 %v3450_v35  ;;  %v3526_v34 = vld [vmem:[%s4314_s1 + $0x90] sm:$0xff]  }
  0x7f   : > { %1546 = vmatpush1.bf16.msra.mxu0 %v3451_v36  ;;  %2149 = vmatpush1.bf16.msra.mxu1 %v3452_v37  ;;  %v3531_v35 = vld [vmem:[%s3720_s20 + $0x94] ss:$8 sps:$4 sm:$0xff]  }
  0x80   : > { %1547 = vmatprep.subr.bf16.mxu0 %v3625_v1  ;;  %2150 = vmatprep.subr.bf16.mxu1 %v3625_v1  ;;  %v3533_v36 = vld [vmem:[%s3720_s20 + $0xd4] ss:$8 sps:$4 sm:$0xff]  }
  0x81   : > { %2813 = vmatprep.mubr.msk.bf16.mxu0 %vm317_vm0, %v3455_v38  ;;  %2928 = vmatprep.mubr.msk.bf16.mxu1 %vm317_vm0, %v3457_v39  ;;  %v3527_v37 = vld [vmem:[%s4314_s1 + $0x98] sm:$0xff]  }
  0x82   : > { %v3528_v38 = vld [vmem:[%s4314_s1 + $0x98] sm:$0xff]  }
  0x83   : > { %1548 = vmatpush1.bf16.msra.mxu0 %v3453_v40  ;;  %2151 = vmatpush1.bf16.msra.mxu1 %v3454_v41  ;;  %v3535_v39 = vld [vmem:[%s3720_s20 + $0x90] ss:$8 sps:$4 sm:$0xff]   ;;  %v3529_v40 = vld [vmem:[%s4314_s1 + $0xa0] sm:$0xff]  }
  0x84   : > { %1549 = vmatprep.subr.bf16.mxu0 %v3625_v1  ;;  %2152 = vmatprep.subr.bf16.mxu1 %v3625_v1  ;;  %v3536_v41 = vld [vmem:[%s3720_s20 + $0xd0] ss:$8 sps:$4 sm:$0xff]  }
  0x86   : > { %744 = vmatmul.mubr.bf16.gmra.mrb[8].mxu0 %v3459_v42  ;;  %1347 = vmatmul.mubr.bf16.gmra.mrb[8].mxu1 %v3460_v43  ;;  %v3530_v42 = vld [vmem:[%s4314_s1 + $0xa0] sm:$0xff]  }
  0x87   : > { %1550 = vmatpush1.bf16.msra.mxu0 %v3461_v44  ;;  %2153 = vmatpush1.bf16.msra.mxu1 %v3462_v45  ;;  %v3541_v43 = vld [vmem:[%s3720_s20 + $0xa4] ss:$8 sps:$4 sm:$0xff]  }
  0x88   : > { %1551 = vmatprep.subr.bf16.mxu0 %v3625_v1  ;;  %2154 = vmatprep.subr.bf16.mxu1 %v3625_v1  ;;  %v3543_v44 = vld [vmem:[%s3720_s20 + $0xe4] ss:$8 sps:$4 sm:$0xff]  }
  0x89   : > { %2814 = vmatprep.mubr.msk.bf16.mxu0 %vm317_vm0, %v3465_v46  ;;  %2929 = vmatprep.mubr.msk.bf16.mxu1 %vm317_vm0, %v3467_v47  ;;  %v3537_v45 = vld [vmem:[%s4314_s1 + $0xa8] sm:$0xff]  }
  0x8a   : > { %v3538_v46 = vld [vmem:[%s4314_s1 + $0xa8] sm:$0xff]  }
  0x8b   : > { %1552 = vmatpush1.bf16.msra.mxu0 %v3463_v48  ;;  %2155 = vmatpush1.bf16.msra.mxu1 %v3464_v49  ;;  %v3545_v47 = vld [vmem:[%s3720_s20 + $0xa0] ss:$8 sps:$4 sm:$0xff]   ;;  %v3539_v48 = vld [vmem:[%s4314_s1 + $0xb0] sm:$0xff]  }
  0x8c   : > { %1553 = vmatprep.subr.bf16.mxu0 %v3625_v1  ;;  %2156 = vmatprep.subr.bf16.mxu1 %v3625_v1  ;;  %v3546_v49 = vld [vmem:[%s3720_s20 + $0xe0] ss:$8 sps:$4 sm:$0xff]  }
  0x8e   : > { %752 = vmatmul.mubr.bf16.gmra.mrb[12].mxu0 %v3469_v50  ;;  %1355 = vmatmul.mubr.bf16.gmra.mrb[12].mxu1 %v3470_v51  ;;  %v3540_v50 = vld [vmem:[%s4314_s1 + $0xb0] sm:$0xff]  }
  0x8f   : > { %1554 = vmatpush1.bf16.msra.mxu0 %v3471_v52  ;;  %2157 = vmatpush1.bf16.msra.mxu1 %v3472_v53  ;;  %v3551_v51 = vld [vmem:[%s3720_s20 + $0xb4] ss:$8 sps:$4 sm:$0xff]  }
  0x90   : > { %1555 = vmatprep.subr.bf16.mxu0 %v3625_v1  ;;  %2158 = vmatprep.subr.bf16.mxu1 %v3625_v1  ;;  %v3553_v52 = vld [vmem:[%s3720_s20 + $0xf4] ss:$8 sps:$4 sm:$0xff]  }
  0x91   : > { %2973 = vmatprep.mubr.msk.bf16.mxu0 %vm317_vm0, %v3479_v54  ;;  %3088 = vmatprep.mubr.msk.bf16.mxu1 %vm317_vm0, %v3482_v55  ;;  %v3547_v53 = vld [vmem:[%s4314_s1 + $0xb8] sm:$0xff]  }
  0x92   : > { %v3548_v54 = vld [vmem:[%s4314_s1 + $0xb8] sm:$0xff]  }
  0x93   : > { %1556 = vmatpush1.bf16.msra.mxu0 %v3473_v56  ;;  %2159 = vmatpush1.bf16.msra.mxu1 %v3474_v57  ;;  %v3555_v55 = vld [vmem:[%s3720_s20 + $0xb0] ss:$8 sps:$4 sm:$0xff]   ;;  %v3549_v56 = vld [vmem:[%s4314_s1 + $0xc0] sm:$0xff]  }
  0x94   : > { %1557 = vmatprep.subr.bf16.mxu0 %v3625_v1  ;;  %2160 = vmatprep.subr.bf16.mxu1 %v3625_v1  ;;  %v3556_v57 = vld [vmem:[%s3720_s20 + $0xf0] ss:$8 sps:$4 sm:$0xff]  }
  0x97   : > { %1558 = vmatpush1.bf16.msra.mxu0 %v3475_v58  ;;  %2161 = vmatpush1.bf16.msra.mxu1 %v3476_v59  ;;  %v3550_v58 = vld [vmem:[%s4314_s1 + $0xc0] sm:$0xff]  }
  0x98   : > { %1708 = vmatprep.subr.bf16.mxu0 %v3625_v1  ;;  %2311 = vmatprep.subr.bf16.mxu1 %v3625_v1  ;;  %v3563_v59 = vld [vmem:[%s3720_s20 + $0x284] ss:$8 sps:$4 sm:$0xff]  }
  0x9a   : > { %1574 = vmatmul.mubr.bf16.vlgmr.msra.gmra.mrb[16].mxu0 %v3477_v60  ;;  %2177 = vmatmul.mubr.bf16.vlgmr.msra.gmra.mrb[16].mxu1 %v3480_v61  ;;  %v3566_v60 = vld [vmem:[%s3720_s20 + $0x2c4] ss:$8 sps:$4 sm:$0xff]  }
  0x9b   : > { %1709 = vmatpush1.bf16.msra.mxu0 %v3483_v62  ;;  %2312 = vmatpush1.bf16.msra.mxu1 %v3484_v63  ;;  %v3557_v61 = vld [vmem:[%s4314_s1 + $0xc8] sm:$0xff]   ;;  %v3559_v63 = vld [vmem:[%s4314_s1 + $0xd0] sm:$0xff]  }
  0x9c   : > { %1710 = vmatprep.subr.bf16.mxu0 %v3625_v1  ;;  %2313 = vmatprep.subr.bf16.mxu1 %v3625_v1  ;;  %v3558_v62 = vld [vmem:[%s4314_s1 + $0xc8] sm:$0xff]  }
  0x9d   : > { %2974 = vmatprep.mubr.msk.bf16.mxu0 %vm317_vm0, %v3489_v0  ;;  %3089 = vmatprep.mubr.msk.bf16.mxu1 %vm317_vm0, %v3491_v2  ;;  %v3560_v0 = vld [vmem:[%s4314_s1 + $0xd0] sm:$0xff]   ;;  %v3561_v2 = vld [vmem:[%s3720_s20 + $0x280] ss:$8 sps:$4 sm:$0xff]  }
  0x9f   : > { %1711 = vmatpush1.bf16.msra.mxu0 %v3485_v3  ;;  %2314 = vmatpush1.bf16.msra.mxu1 %v3486_v4  ;;  %v3564_v3 = vld [vmem:[%s3720_s20 + $0x2c0] ss:$8 sps:$4 sm:$0xff]   ;;  %v3567_v4 = vld [vmem:[%s3720_s20 + $0x294] ss:$8 sps:$4 sm:$0xff]  }
  0xa0   : > { %1712 = vmatprep.subr.bf16.mxu0 %v3625_v1  ;;  %2315 = vmatprep.subr.bf16.mxu1 %v3625_v1 }
  0xa2   : > { %1582 = vmatmul.mubr.bf16.gmra.mrb[20].mxu0 %v3493_v5  ;;  %2185 = vmatmul.mubr.bf16.gmra.mrb[20].mxu1 %v3495_v7  ;;  %v3569_v5 = vld [vmem:[%s3720_s20 + $0x2d4] ss:$8 sps:$4 sm:$0xff]   ;;  %v3572_v7 = vld [vmem:[%s3720_s20 + $0x2d0] ss:$8 sps:$4 sm:$0xff]  }
  0xa3   : > { %1713 = vmatpush1.bf16.msra.mxu0 %v3487_v6  ;;  %2316 = vmatpush1.bf16.msra.mxu1 %v3488_v8  ;;  %v3571_v6 = vld [vmem:[%s3720_s20 + $0x290] ss:$8 sps:$4 sm:$0xff]   ;;  %v3575_v8 = vld [vmem:[%s3720_s20 + $0x2e4] ss:$8 sps:$4 sm:$0xff]  }
  0xa4   : > { %1714 = vmatprep.subr.bf16.mxu0 %v3625_v1  ;;  %2317 = vmatprep.subr.bf16.mxu1 %v3625_v1 }
  0xa5   : > { %2975 = vmatprep.mubr.msk.bf16.mxu0 %vm317_vm0, %v3499_v9  ;;  %3090 = vmatprep.mubr.msk.bf16.mxu1 %vm317_vm0, %v3501_v10  ;;  %v3577_v9 = vld [vmem:[%s3720_s20 + $0x2a0] ss:$8 sps:$4 sm:$0xff]  }
  0xa6   : > { %v3578_v10 = vld [vmem:[%s3720_s20 + $0x2e0] ss:$8 sps:$4 sm:$0xff]  }
  0xa7   : > { %1715 = vmatpush1.bf16.msra.mxu0 %v3494_v11  ;;  %2318 = vmatpush1.bf16.msra.mxu1 %v3496_v12  ;;  %v3579_v11 = vld [vmem:[%s3720_s20 + $0x2b4] ss:$8 sps:$4 sm:$0xff]  }
  0xa8   : > { %1716 = vmatprep.subr.bf16.mxu0 %v3625_v1  ;;  %2319 = vmatprep.subr.bf16.mxu1 %v3625_v1  ;;  %v3581_v12 = vld [vmem:[%s3720_s20 + $0x2f4] ss:$8 sps:$4 sm:$0xff]  }
  0xaa   : > { %1590 = vmatmul.mubr.bf16.gmra.mrb[24].mxu0 %v3503_v14  ;;  %2193 = vmatmul.mubr.bf16.gmra.mrb[24].mxu1 %v3505_v15  ;;  %v3584_v14 = vld [vmem:[%s3720_s20 + $0x2f0] ss:$8 sps:$4 sm:$0xff]  }
  0xab   : > { %1717 = vmatpush1.bf16.msra.mxu0 %v3497_v13  ;;  %2320 = vmatpush1.bf16.msra.mxu1 %v3498_v16  ;;  %v3583_v13 = vld [vmem:[%s3720_s20 + $0x2b0] ss:$8 sps:$4 sm:$0xff]  }
  0xac   : > { %1718 = vmatprep.subr.bf16.mxu0 %v3625_v1  ;;  %2321 = vmatprep.subr.bf16.mxu1 %v3625_v1 }
  0xad   : > { %2976 = vmatprep.mubr.msk.bf16.mxu0 %vm317_vm0, %v3509_v17  ;;  %3091 = vmatprep.mubr.msk.bf16.mxu1 %vm317_vm0, %v3511_v18 }
  0xaf   : > { %1719 = vmatpush1.bf16.msra.mxu0 %v3504_v19  ;;  %2322 = vmatpush1.bf16.msra.mxu1 %v3506_v20 }
  0xb0   : > { %1720 = vmatprep.subr.bf16.mxu0 %v3625_v1  ;;  %2323 = vmatprep.subr.bf16.mxu1 %v3625_v1 }
  0xb2   : > { %1598 = vmatmul.mubr.bf16.gmra.mrb[28].mxu0 %v3513_v21  ;;  %2201 = vmatmul.mubr.bf16.gmra.mrb[28].mxu1 %v3515_v23 }
  0xb3   : > { %1721 = vmatpush1.bf16.msra.mxu0 %v3507_v22  ;;  %2324 = vmatpush1.bf16.msra.mxu1 %v3508_v24 }
  0xb4   : > { %1722 = vmatprep.subr.bf16.mxu0 %v3625_v1  ;;  %2325 = vmatprep.subr.bf16.mxu1 %v3625_v1 }
  0xb5   : > { %2994 = vmatprep.mubr.msk.bf16.mxu0 %vm317_vm0, %v3521_v25  ;;  %3109 = vmatprep.mubr.msk.bf16.mxu1 %vm317_vm0, %v3524_v26 }
  0xb7   : > { %1723 = vmatpush1.bf16.msra.mxu0 %v3514_v27  ;;  %2326 = vmatpush1.bf16.msra.mxu1 %v3516_v28 }
  0xb8   : > { %1724 = vmatprep.subr.bf16.mxu0 %v3625_v1  ;;  %2327 = vmatprep.subr.bf16.mxu1 %v3625_v1 }
  0xbb   : > { %1725 = vmatpush1.bf16.msra.mxu0 %v3517_v29  ;;  %2328 = vmatpush1.bf16.msra.mxu1 %v3518_v30 }
  0xbc   : > { %1901 = vmatprep.subr.bf16.mxu0 %v3625_v1  ;;  %2504 = vmatprep.subr.bf16.mxu1 %v3625_v1 }
  0xbe   : > { %1741 = vmatmul.mubr.bf16.vlgmr.msra.gmra.mrb[16].mxu0 %v3519_v31  ;;  %2344 = vmatmul.mubr.bf16.vlgmr.msra.gmra.mrb[16].mxu1 %v3522_v32 }
  0xbf   : > { %1902 = vmatpush1.bf16.msra.mxu0 %v3525_v33  ;;  %2505 = vmatpush1.bf16.msra.mxu1 %v3526_v34 }
  0xc0   : > { %1903 = vmatprep.subr.bf16.mxu0 %v3625_v1  ;;  %2506 = vmatprep.subr.bf16.mxu1 %v3625_v1 }
  0xc1   : > { %2995 = vmatprep.mubr.msk.bf16.mxu0 %vm317_vm0, %v3531_v35  ;;  %3110 = vmatprep.mubr.msk.bf16.mxu1 %vm317_vm0, %v3533_v36 }
  0xc3   : > { %1904 = vmatpush1.bf16.msra.mxu0 %v3527_v37  ;;  %2507 = vmatpush1.bf16.msra.mxu1 %v3528_v38 }
  0xc4   : > { %1905 = vmatprep.subr.bf16.mxu0 %v3625_v1  ;;  %2508 = vmatprep.subr.bf16.mxu1 %v3625_v1 }
  0xc6   : > { %1749 = vmatmul.mubr.bf16.gmra.mrb[20].mxu0 %v3535_v39  ;;  %2352 = vmatmul.mubr.bf16.gmra.mrb[20].mxu1 %v3536_v41 }
  0xc7   : > { %1906 = vmatpush1.bf16.msra.mxu0 %v3529_v40  ;;  %2509 = vmatpush1.bf16.msra.mxu1 %v3530_v42 }
  0xc8   : > { %1907 = vmatprep.subr.bf16.mxu0 %v3625_v1  ;;  %2510 = vmatprep.subr.bf16.mxu1 %v3625_v1 }
  0xc9   : > { %2996 = vmatprep.mubr.msk.bf16.mxu0 %vm317_vm0, %v3541_v43  ;;  %3111 = vmatprep.mubr.msk.bf16.mxu1 %vm317_vm0, %v3543_v44 }
  0xcb   : > { %1908 = vmatpush1.bf16.msra.mxu0 %v3537_v45  ;;  %2511 = vmatpush1.bf16.msra.mxu1 %v3538_v46 }
  0xcc   : > { %1909 = vmatprep.subr.bf16.mxu0 %v3625_v1  ;;  %2512 = vmatprep.subr.bf16.mxu1 %v3625_v1 }
  0xce   : > { %1757 = vmatmul.mubr.bf16.gmra.mrb[24].mxu0 %v3545_v47  ;;  %2360 = vmatmul.mubr.bf16.gmra.mrb[24].mxu1 %v3546_v49 }
  0xcf   : > { %1910 = vmatpush1.bf16.msra.mxu0 %v3539_v48  ;;  %2513 = vmatpush1.bf16.msra.mxu1 %v3540_v50 }
  0xd0   : > { %1911 = vmatprep.subr.bf16.mxu0 %v3625_v1  ;;  %2514 = vmatprep.subr.bf16.mxu1 %v3625_v1 }
  0xd1   : > { %2997 = vmatprep.mubr.msk.bf16.mxu0 %vm317_vm0, %v3551_v51  ;;  %3112 = vmatprep.mubr.msk.bf16.mxu1 %vm317_vm0, %v3553_v52 }
  0xd3   : > { %1912 = vmatpush1.bf16.msra.mxu0 %v3547_v53  ;;  %2515 = vmatpush1.bf16.msra.mxu1 %v3548_v54 }
  0xd4   : > { %1913 = vmatprep.subr.bf16.mxu0 %v3625_v1  ;;  %2516 = vmatprep.subr.bf16.mxu1 %v3625_v1 }
  0xd6   : > { %1765 = vmatmul.mubr.bf16.gmra.mrb[28].mxu0 %v3555_v55  ;;  %2368 = vmatmul.mubr.bf16.gmra.mrb[28].mxu1 %v3556_v57 }
  0xd7   : > { %1914 = vmatpush1.bf16.msra.mxu0 %v3549_v56  ;;  %2517 = vmatpush1.bf16.msra.mxu1 %v3550_v58 }
  0xd8   : > { %1915 = vmatprep.subr.bf16.mxu0 %v3625_v1  ;;  %2518 = vmatprep.subr.bf16.mxu1 %v3625_v1 }
  0xd9   : > { %3041 = vmatprep.mubr.msk.bf16.mxu0 %vm317_vm0, %v3563_v59  ;;  %3156 = vmatprep.mubr.msk.bf16.mxu1 %vm317_vm0, %v3566_v60 }
  0xdb   : > { %1916 = vmatpush1.bf16.msra.mxu0 %v3557_v61  ;;  %2519 = vmatpush1.bf16.msra.mxu1 %v3558_v62 }
  0xdc   : > { %1917 = vmatprep.subr.bf16.mxu0 %v3625_v1  ;;  %2520 = vmatprep.subr.bf16.mxu1 %v3625_v1  ;;  %v3573_v1 = vld [vmem:[%s3720_s20 + $0x2a4] ss:$8 sps:$4 sm:$0xff]  }
  0xdf   : > { %1918 = vmatpush1.bf16.msra.mxu0 %v3559_v63  ;;  %2521 = vmatpush1.bf16.msra.mxu1 %v3560_v0 }
  0xe2   : > { %1934 = vmatmul.mubr.bf16.vlgmr.msra.gmra.mrb[16].mxu0 %v3561_v2  ;;  %2537 = vmatmul.mubr.bf16.vlgmr.msra.gmra.mrb[16].mxu1 %v3564_v3 }
  0xe3   : > { %3042 = vmatprep.mubr.msk.bf16.mxu0 %vm317_vm0, %v3567_v4  ;;  %3157 = vmatprep.mubr.msk.bf16.mxu1 %vm317_vm0, %v3569_v5 }
  0xea   : > { %1942 = vmatmul.mubr.bf16.gmra.mrb[20].mxu0 %v3571_v6  ;;  %2545 = vmatmul.mubr.bf16.gmra.mrb[20].mxu1 %v3572_v7 }
  0xeb   : > { %3043 = vmatprep.mubr.msk.bf16.mxu0 %vm317_vm0, %v3573_v1  ;;  %3158 = vmatprep.mubr.msk.bf16.mxu1 %vm317_vm0, %v3575_v8 }
  0xf2   : > { %1950 = vmatmul.mubr.bf16.gmra.mrb[24].mxu0 %v3577_v9  ;;  %2553 = vmatmul.mubr.bf16.gmra.mrb[24].mxu1 %v3578_v10 }
  0xf3   : > { %3044 = vmatprep.mubr.msk.bf16.mxu0 %vm317_vm0, %v3579_v11  ;;  %3159 = vmatprep.mubr.msk.bf16.mxu1 %vm317_vm0, %v3581_v12 }
  0xfa   : > { %1958 = vmatmul.mubr.bf16.gmra.mrb[28].mxu0 %v3583_v13  ;;  %2561 = vmatmul.mubr.bf16.gmra.mrb[28].mxu1 %v3584_v14 }
 0x149   : > { %v729_v15 = vpop.f32.mrb[0].mxu0  ;;  %v1332_v17 = vpop.f32.mrb[0].mxu1 }
 0x14a   : > { %v768_v16 = vmax.f32 %v729_v15, 0.0  ;;  %v731_v18 = vpop.f32.mrb[1].mxu0  ;;  %v1371_v19 = vmax.f32 %v1332_v17, 0.0  ;;  %v1334_v20 = vpop.f32.mrb[1].mxu1 }
 0x14b   : > { %v732_v21 = vpop.f32.mrb[2].mxu0  ;;  %v1335_v23 = vpop.f32.mrb[2].mxu1 }
 0x14c   : > { %776 = vst [vmem:[%s4264_s23] sm:$0xff] %v768_v16  ;;  %v769_v22 = vmax.f32 %v732_v21, 0.0  ;;  %v734_v24 = vpop.f32.mrb[3].mxu0  ;;  %1379 = vst [vmem:[%s4264_s23 + $0x40] sm:$0xff] %v1371_v19  ;;  %v1372_v25 = vmax.f32 %v1335_v23, 0.0  ;;  %v1337_v26 = vpop.f32.mrb[3].mxu1 }
 0x14e   : > { %777 = vst [vmem:[%s4264_s23 + $0x8] sm:$0xff] %v769_v22  ;;  %1380 = vst [vmem:[%s4264_s23 + $0x48] sm:$0xff] %v1372_v25 }
 0x151   : > { %v737_v27 = vpop.f32.mrb[4].mxu0  ;;  %v1340_v29 = vpop.f32.mrb[4].mxu1 }
 0x152   : > { %v770_v28 = vmax.f32 %v737_v27, 0.0  ;;  %v739_v30 = vpop.f32.mrb[5].mxu0  ;;  %v1373_v31 = vmax.f32 %v1340_v29, 0.0  ;;  %v1342_v32 = vpop.f32.mrb[5].mxu1 }
 0x153   : > { %v740_v33 = vpop.f32.mrb[6].mxu0  ;;  %v1343_v35 = vpop.f32.mrb[6].mxu1 }
 0x154   : > { %778 = vst [vmem:[%s4264_s23 + $0x10] sm:$0xff] %v770_v28  ;;  %v771_v34 = vmax.f32 %v740_v33, 0.0  ;;  %v742_v36 = vpop.f32.mrb[7].mxu0  ;;  %1381 = vst [vmem:[%s4264_s23 + $0x50] sm:$0xff] %v1373_v31  ;;  %v1374_v37 = vmax.f32 %v1343_v35, 0.0  ;;  %v1345_v38 = vpop.f32.mrb[7].mxu1 }
 0x156   : > { %779 = vst [vmem:[%s4264_s23 + $0x18] sm:$0xff] %v771_v34  ;;  %1382 = vst [vmem:[%s4264_s23 + $0x58] sm:$0xff] %v1374_v37 }
 0x159   : > { %v745_v39 = vpop.f32.mrb[8].mxu0  ;;  %v1348_v41 = vpop.f32.mrb[8].mxu1 }
 0x15a   : > { %v772_v40 = vmax.f32 %v745_v39, 0.0  ;;  %v747_v42 = vpop.f32.mrb[9].mxu0  ;;  %v1375_v43 = vmax.f32 %v1348_v41, 0.0  ;;  %v1350_v44 = vpop.f32.mrb[9].mxu1 }
 0x15b   : > { %v748_v45 = vpop.f32.mrb[10].mxu0  ;;  %v1351_v47 = vpop.f32.mrb[10].mxu1 }
 0x15c   : > { %780 = vst [vmem:[%s4264_s23 + $0x20] sm:$0xff] %v772_v40  ;;  %v773_v46 = vmax.f32 %v748_v45, 0.0  ;;  %v750_v48 = vpop.f32.mrb[11].mxu0  ;;  %1383 = vst [vmem:[%s4264_s23 + $0x60] sm:$0xff] %v1375_v43  ;;  %v1376_v49 = vmax.f32 %v1351_v47, 0.0  ;;  %v1353_v50 = vpop.f32.mrb[11].mxu1 }
 0x15e   : > { %781 = vst [vmem:[%s4264_s23 + $0x28] sm:$0xff] %v773_v46  ;;  %1384 = vst [vmem:[%s4264_s23 + $0x68] sm:$0xff] %v1376_v49 }
 0x161   : > { %v753_v51 = vpop.f32.mrb[12].mxu0  ;;  %v1356_v53 = vpop.f32.mrb[12].mxu1 }
 0x162   : > { %v774_v52 = vmax.f32 %v753_v51, 0.0  ;;  %v755_v54 = vpop.f32.mrb[13].mxu0  ;;  %v1377_v55 = vmax.f32 %v1356_v53, 0.0  ;;  %v1358_v56 = vpop.f32.mrb[13].mxu1 }
 0x163   : > { %v756_v57 = vpop.f32.mrb[14].mxu0  ;;  %v1359_v59 = vpop.f32.mrb[14].mxu1 }
 0x164   : > { %782 = vst [vmem:[%s4264_s23 + $0x30] sm:$0xff] %v774_v52  ;;  %v775_v58 = vmax.f32 %v756_v57, 0.0  ;;  %v758_v60 = vpop.f32.mrb[15].mxu0  ;;  %1385 = vst [vmem:[%s4264_s23 + $0x70] sm:$0xff] %v1377_v55  ;;  %v1378_v61 = vmax.f32 %v1359_v59, 0.0  ;;  %v1361_v62 = vpop.f32.mrb[15].mxu1 }
 0x166   : > { %783 = vst [vmem:[%s4264_s23 + $0x38] sm:$0xff] %v775_v58  ;;  %1386 = vst [vmem:[%s4264_s23 + $0x78] sm:$0xff] %v1378_v61 }
 0x1b5   : > { %v1935_v63 = vpop.f32.mrb[16].mxu0  ;;  %v2538_v2 = vpop.f32.mrb[16].mxu1 }
 0x1b6   : > { %v1974_v0 = vmax.f32 %v1935_v63, 0.0  ;;  %v1937_v3 = vpop.f32.mrb[17].mxu0  ;;  %v2577_v4 = vmax.f32 %v2538_v2, 0.0  ;;  %v2540_v5 = vpop.f32.mrb[17].mxu1 }
 0x1b7   : > { %v1938_v6 = vpop.f32.mrb[18].mxu0  ;;  %v2541_v1 = vpop.f32.mrb[18].mxu1 }
 0x1b8   : > { %1982 = vst [vmem:[%s4264_s23 + $0x80] sm:$0xff] %v1974_v0  ;;  %v1975_v7 = vmax.f32 %v1938_v6, 0.0  ;;  %v1940_v8 = vpop.f32.mrb[19].mxu0  ;;  %2585 = vst [vmem:[%s4264_s23 + $0xc0] sm:$0xff] %v2577_v4  ;;  %v2578_v9 = vmax.f32 %v2541_v1, 0.0  ;;  %v2543_v10 = vpop.f32.mrb[19].mxu1 }
 0x1ba   : > { %1983 = vst [vmem:[%s4264_s23 + $0x88] sm:$0xff] %v1975_v7  ;;  %2586 = vst [vmem:[%s4264_s23 + $0xc8] sm:$0xff] %v2578_v9 }
 0x1bd   : > { %v1943_v11 = vpop.f32.mrb[20].mxu0  ;;  %v2546_v13 = vpop.f32.mrb[20].mxu1 }
 0x1be   : > { %v1976_v12 = vmax.f32 %v1943_v11, 0.0  ;;  %v1945_v14 = vpop.f32.mrb[21].mxu0  ;;  %v2579_v15 = vmax.f32 %v2546_v13, 0.0  ;;  %v2548_v16 = vpop.f32.mrb[21].mxu1 }
 0x1bf   : > { %v1946_v17 = vpop.f32.mrb[22].mxu0  ;;  %v2549_v19 = vpop.f32.mrb[22].mxu1 }
 0x1c0   : > { %1984 = vst [vmem:[%s4264_s23 + $0x90] sm:$0xff] %v1976_v12  ;;  %v1977_v18 = vmax.f32 %v1946_v17, 0.0  ;;  %v1948_v20 = vpop.f32.mrb[23].mxu0  ;;  %2587 = vst [vmem:[%s4264_s23 + $0xd0] sm:$0xff] %v2579_v15  ;;  %v2580_v21 = vmax.f32 %v2549_v19, 0.0  ;;  %v2551_v22 = vpop.f32.mrb[23].mxu1 }
 0x1c2   : > { %1985 = vst [vmem:[%s4264_s23 + $0x98] sm:$0xff] %v1977_v18  ;;  %2588 = vst [vmem:[%s4264_s23 + $0xd8] sm:$0xff] %v2580_v21 }
 0x1c5   : > { %v1951_v23 = vpop.f32.mrb[24].mxu0  ;;  %v2554_v25 = vpop.f32.mrb[24].mxu1 }
 0x1c6   : > { %v1978_v24 = vmax.f32 %v1951_v23, 0.0  ;;  %v1953_v26 = vpop.f32.mrb[25].mxu0  ;;  %v2581_v27 = vmax.f32 %v2554_v25, 0.0  ;;  %v2556_v28 = vpop.f32.mrb[25].mxu1 }
 0x1c7   : > { %v1954_v29 = vpop.f32.mrb[26].mxu0  ;;  %v2557_v31 = vpop.f32.mrb[26].mxu1 }
 0x1c8   : > { %1986 = vst [vmem:[%s4264_s23 + $0xa0] sm:$0xff] %v1978_v24  ;;  %v1979_v30 = vmax.f32 %v1954_v29, 0.0  ;;  %v1956_v32 = vpop.f32.mrb[27].mxu0  ;;  %2589 = vst [vmem:[%s4264_s23 + $0xe0] sm:$0xff] %v2581_v27  ;;  %v2582_v33 = vmax.f32 %v2557_v31, 0.0  ;;  %v2559_v34 = vpop.f32.mrb[27].mxu1 }
 0x1ca   : > { %1987 = vst [vmem:[%s4264_s23 + $0xa8] sm:$0xff] %v1979_v30  ;;  %2590 = vst [vmem:[%s4264_s23 + $0xe8] sm:$0xff] %v2582_v33 }
 0x1cd   : > { %v1959_v35 = vpop.f32.mrb[28].mxu0  ;;  %v2562_v37 = vpop.f32.mrb[28].mxu1 }
 0x1ce   : > { %v1980_v36 = vmax.f32 %v1959_v35, 0.0  ;;  %v1961_v38 = vpop.f32.mrb[29].mxu0  ;;  %v2583_v39 = vmax.f32 %v2562_v37, 0.0  ;;  %v2564_v40 = vpop.f32.mrb[29].mxu1 }
 0x1cf   : > { %v1962_v41 = vpop.f32.mrb[30].mxu0  ;;  %v2565_v43 = vpop.f32.mrb[30].mxu1 }
 0x1d0   : > { %1988 = vst [vmem:[%s4264_s23 + $0xb0] sm:$0xff] %v1980_v36  ;;  %v1981_v42 = vmax.f32 %v1962_v41, 0.0  ;;  %v1964_v44 = vpop.f32.mrb[31].mxu0  ;;  %2591 = vst [vmem:[%s4264_s23 + $0xf0] sm:$0xff] %v2583_v39  ;;  %v2584_v45 = vmax.f32 %v2565_v43, 0.0  ;;  %v2567_v46 = vpop.f32.mrb[31].mxu1 }
 0x1d2   : > { %1989 = vst [vmem:[%s4264_s23 + $0xb8] sm:$0xff] %v1981_v42  ;;  %2592 = vst [vmem:[%s4264_s23 + $0xf8] sm:$0xff] %v2584_v45 }
 0x1d3 PF: > { %s12_s13 = sadd.s32 1, %s3623_s13   ;;  %s4316_s9 = smov %s3615_s11 }
 0x1d4   : > { %p9_p7 = scmp.ge.s32.totalorder %s12_s13, 18   ;;  %s4317_s10 = smov %s3619_s12 }
 0x1d5   : > { %s4318_s11 = smov %s4321_s14  ;;  %s4319_s12 = smov %s4325_s15 }
 0x1d6   :  { %11 = sbr.rel (!%p9_p7) target bundleno = 3 (0x3), region = 63 }

</bundles_post_ra>
